<compile_context>
chip_gen: v6e
topology: v6e:2x2x1
jax: 0.10.0
libtpu: 0.0.40
codegen_flags: <defaults>
</compile_context>

<pallas_src>
import math

import jax
import jax.numpy as jnp
from jax import lax
from jax.experimental import pallas as pl
from jax.experimental.pallas import tpu as pltpu

EPS = 1e-5          # nn.LayerNorm default eps
NEG_INF = -1.0e9    # masked_fill_ value in the reference module


# --------------------------- fused stack kernel ----------------------------
def encoder_stack_kernel(lens_ref, x_ref,
                         wq_ref, bq_ref, wk_ref, bk_ref, wv_ref, bv_ref,
                         wo_ref, bo_ref, g1_ref, be1_ref,
                         w1_ref, b1_ref, w2_ref, b2_ref, g2_ref, be2_ref,
                         o_ref):
    b = pl.program_id(0)
    layer = pl.program_id(1)

    S, E = x_ref.shape              # (S, E) after leading batch dim is squeezed
    H, _, Dh = wq_ref.shape         # per-head weights (H, E, Dh)

    # Layer 0: seed the resident output block with the embedded input.
    @pl.when(layer == 0)
    def _():
        o_ref[...] = x_ref[...]

    x = o_ref[...]                  # running activation, resident across layers

    # Key-padding mask rebuilt from the prefetched per-batch length (SMEM).
    length = lens_ref[b]
    key_ok = lax.broadcasted_iota(jnp.int32, (1, S, S), 2) < length   # (1, S, S)

    # ---- multi-head self attention (heads batched on a leading axis) ----
    xb = jnp.broadcast_to(x[None], (H, S, E))
    q = jnp.einsum("hse,hed->hsd", xb, wq_ref[...],
                   preferred_element_type=jnp.float32) + bq_ref[...]
    k = jnp.einsum("hse,hed->hsd", xb, wk_ref[...],
                   preferred_element_type=jnp.float32) + bk_ref[...]
    v = jnp.einsum("hse,hed->hsd", xb, wv_ref[...],
                   preferred_element_type=jnp.float32) + bv_ref[...]

    scores = jnp.einsum("hqd,hkd->hqk", q, k,
                        preferred_element_type=jnp.float32) * (1.0 / math.sqrt(Dh))
    scores = jnp.where(key_ok, scores, NEG_INF)
    scores = scores - jnp.max(scores, axis=-1, keepdims=True)
    e = jnp.exp(scores)
    attn = e * pl.reciprocal(jnp.sum(e, axis=-1, keepdims=True), approx=True)

    ctx = jnp.einsum("hqk,hkd->hqd", attn, v,
                     preferred_element_type=jnp.float32)              # (H, S, Dh)
    attn_out = jnp.sum(jnp.einsum("hqd,hde->hqe", ctx, wo_ref[...],
                                  preferred_element_type=jnp.float32),
                       axis=0) + bo_ref[...]                          # (S, E)

    # ---- residual + LayerNorm 1 (dropout = identity) ----
    x1 = x + attn_out
    m1 = jnp.mean(x1, axis=-1, keepdims=True)
    v1 = jnp.mean((x1 - m1) ** 2, axis=-1, keepdims=True)
    x1 = (x1 - m1) * lax.rsqrt(v1 + EPS) * g1_ref[...] + be1_ref[...]

    # ---- feed-forward ----
    h1 = jnp.dot(x1, w1_ref[...], preferred_element_type=jnp.float32) + b1_ref[...]
    h1 = jnp.maximum(h1, 0.0)
    ff = jnp.dot(h1, w2_ref[...], preferred_element_type=jnp.float32) + b2_ref[...]

    # ---- residual + LayerNorm 2 ----
    x2 = x1 + ff
    m2 = jnp.mean(x2, axis=-1, keepdims=True)
    v2 = jnp.mean((x2 - m2) ** 2, axis=-1, keepdims=True)
    x2 = (x2 - m2) * lax.rsqrt(v2 + EPS) * g2_ref[...] + be2_ref[...]

    o_ref[...] = x2.astype(o_ref.dtype)


# ------------------------------ host wrapper -------------------------------
def make_encoder_call(B, S, E, H, Hid, L):
    Dh = E // H

    def wspec(*shape):
        n = len(shape)
        # stacked weight: leading layer dim selected by the layer grid index.
        return pl.BlockSpec((None,) + shape,
                            lambda bb, ll, lens, _n=n: (ll,) + (0,) * _n)

    in_specs = [
        pl.BlockSpec((None, S, E), lambda bb, ll, lens: (bb, 0, 0)),   # embedded x
        wspec(H, E, Dh), wspec(H, 1, Dh),      # Wq, bq (pre-split per head)
        wspec(H, E, Dh), wspec(H, 1, Dh),      # Wk, bk
        wspec(H, E, Dh), wspec(H, 1, Dh),      # Wv, bv
        wspec(H, Dh, E), wspec(1, E),          # Wo (per-head rows), bo
        wspec(1, E), wspec(1, E),              # gamma1, beta1
        wspec(E, Hid), wspec(1, Hid),          # W1, b1
        wspec(Hid, E), wspec(1, E),            # W2, b2
        wspec(1, E), wspec(1, E),              # gamma2, beta2
    ]

    flops = B * L * (8 * S * E * E + 4 * S * S * E + 4 * S * E * Hid)
    transcendentals = B * L * (H * S * S + H * S + 2 * S)
    bytes_accessed = 4 * (2 * B * S * E + B
                          + L * (4 * E * E + 2 * E * Hid + 8 * E + Hid))

    return pl.pallas_call(
        encoder_stack_kernel,
        out_shape=jax.ShapeDtypeStruct((B, S, E), jnp.float32),
        grid_spec=pltpu.PrefetchScalarGridSpec(
            num_scalar_prefetch=1,
            grid=(B, L),
            in_specs=in_specs,
            out_specs=pl.BlockSpec((None, S, E), lambda bb, ll, lens: (bb, 0, 0)),
        ),
        compiler_params=pltpu.CompilerParams(
            dimension_semantics=("parallel", "arbitrary")),
        cost_estimate=pl.CostEstimate(flops=flops,
                                      transcendentals=transcendentals,
                                      bytes_accessed=bytes_accessed),
    )


def pack_layer_params(layers, E, H):
    """Stack per-layer params on a leading layer axis and pre-split heads."""
    Dh = E // H
    L = len(layers)

    def stack(name):
        return jnp.stack([lp[name] for lp in layers], axis=0)

    def split_out(w):   # (L, E, E) -> (L, H, E, Dh): head h owns output cols
        return w.reshape(L, E, H, Dh).transpose(0, 2, 1, 3)

    def split_bias(bv):  # (L, 1, E) -> (L, H, 1, Dh)
        return bv.reshape(L, 1, H, Dh).transpose(0, 2, 1, 3)

    wq = split_out(stack("wq")); bq = split_bias(stack("bq"))
    wk = split_out(stack("wk")); bk = split_bias(stack("bk"))
    wv = split_out(stack("wv")); bv = split_bias(stack("bv"))
    wo = stack("wo").reshape(L, H, Dh, E)           # head h owns input rows
    bo = stack("bo")
    g1 = stack("g1"); be1 = stack("be1")
    w1 = stack("w1"); b1 = stack("b1")
    w2 = stack("w2"); b2 = stack("b2")
    g2 = stack("g2"); be2 = stack("be2")
    return (wq, bq, wk, bk, wv, bv, wo, bo, g1, be1, w1, b1, w2, b2, g2, be2)


def encoder_forward(tokens, lengths, params, packed, encoder_call):
    # Embedding lookup + (identity) dropout kept as plain-JAX glue.
    x = jnp.take(params["embed"], tokens, axis=0)        # (B, S, E) f32
    return encoder_call(lengths, x, *packed)


# ----------------------- pure-JAX reference (sanity) -----------------------
def _layer_norm(x, g, b):
    m = jnp.mean(x, axis=-1, keepdims=True)
    v = jnp.mean((x - m) ** 2, axis=-1, keepdims=True)
    return (x - m) / jnp.sqrt(v + EPS) * g + b


def ref_forward(tokens, mask, params, H):
    x = params["embed"][tokens]
    B, S, E = x.shape
    Dh = E // H
    for lp in params["layers"]:
        q = x @ lp["wq"] + lp["bq"][0]
        k = x @ lp["wk"] + lp["bk"][0]
        v = x @ lp["wv"] + lp["bv"][0]
        q = q.reshape(B, S, H, Dh).transpose(0, 2, 1, 3)
        k = k.reshape(B, S, H, Dh).transpose(0, 2, 1, 3)
        v = v.reshape(B, S, H, Dh).transpose(0, 2, 1, 3)
        scores = jnp.einsum("bhqd,bhkd->bhqk", q, k) / math.sqrt(Dh)
        scores = jnp.where(mask[:, None, :, :] == 0, NEG_INF, scores)
        attn = jax.nn.softmax(scores, axis=-1)
        out = jnp.einsum("bhqk,bhkd->bhqd", attn, v)
        out = out.transpose(0, 2, 1, 3).reshape(B, S, E)
        out = out @ lp["wo"] + lp["bo"][0]
        x = _layer_norm(x + out, lp["g1"][0], lp["be1"][0])
        ff = jnp.maximum(x @ lp["w1"] + lp["b1"][0], 0.0) @ lp["w2"] + lp["b2"][0]
        x = _layer_norm(x + ff, lp["g2"][0], lp["be2"][0])
    return x


# ----------------------------- parameter init ------------------------------
def init_params(key, vocab, E, Hid, num_layers):
    keys = jax.random.split(key, 1 + num_layers)
    embed = jax.random.normal(keys[0], (vocab, E), jnp.float32) * 0.02
    layers = []
    for i in range(num_layers):
        lk = jax.random.split(keys[1 + i], 12)

        def w(k, din, dout):
            return jax.random.normal(k, (din, dout), jnp.float32) * 0.05

        def b(k, d):
            return jax.random.normal(k, (1, d), jnp.float32) * 0.01

        layers.append(dict(
            wq=w(lk[0], E, E), bq=b(lk[1], E),
            wk=w(lk[2], E, E), bk=b(lk[3], E),
            wv=w(lk[4], E, E), bv=b(lk[5], E),
            wo=w(lk[6], E, E), bo=b(lk[7], E),
            g1=jnp.ones((1, E), jnp.float32), be1=jnp.zeros((1, E), jnp.float32),
            w1=w(lk[8], E, Hid), b1=b(lk[9], Hid),
            w2=w(lk[10], Hid, E), b2=b(lk[11], E),
            g2=jnp.ones((1, E), jnp.float32), be2=jnp.zeros((1, E), jnp.float32),
        ))
    return dict(embed=embed, layers=layers)


if __name__ == "__main__":
    B, S = 2, 8
    VOCAB, E, HID, H, NUM_LAYERS = 50, 128, 256, 4, 2

    key = jax.random.PRNGKey(0)
    k_par, k_tok = jax.random.split(key)
    params = init_params(k_par, VOCAB, E, HID, NUM_LAYERS)

    tokens = jax.random.randint(k_tok, (B, S), 0, VOCAB, dtype=jnp.int32)
    # padding-style mask: batch 0 sees all S tokens, batch 1 sees first 5.
    lengths = jnp.array([S, 5], dtype=jnp.int32)

    packed = pack_layer_params(params["layers"], E, H)
    encoder_call = make_encoder_call(B, S, E, H, HID, NUM_LAYERS)

    out = encoder_forward(tokens, lengths, params, packed, encoder_call)
    out = jax.block_until_ready(out)

    # reference uses the explicit (B, S, S) mask built from the same lengths
    key_mask = (jnp.arange(S)[None, :] < lengths[:, None]).astype(jnp.int32)
    mask = jnp.broadcast_to(key_mask[:, None, :], (B, S, S)).astype(jnp.int32)
    ref = jax.block_until_ready(ref_forward(tokens, mask, params, H))

    assert out.shape == (B, S, E)
    assert jnp.allclose(out, ref, atol=2e-2, rtol=2e-2), "mismatch vs reference"

    print("KERNEL_OK")
</pallas_src>

<mosaic_0001>
module attributes {stable_mosaic.version = 11 : i64} {
  func.func @encoder_stack_kernel(%arg0: i32, %arg1: i32, %arg2: memref<2xi32, #tpu.memory_space<smem>>, %arg3: memref<1x8x128xf32, #tpu.memory_space<vmem>>, %arg4: memref<1x4x128x32xf32, #tpu.memory_space<vmem>>, %arg5: memref<1x4x1x32xf32, #tpu.memory_space<vmem>>, %arg6: memref<1x4x128x32xf32, #tpu.memory_space<vmem>>, %arg7: memref<1x4x1x32xf32, #tpu.memory_space<vmem>>, %arg8: memref<1x4x128x32xf32, #tpu.memory_space<vmem>>, %arg9: memref<1x4x1x32xf32, #tpu.memory_space<vmem>>, %arg10: memref<1x4x32x128xf32, #tpu.memory_space<vmem>>, %arg11: memref<1x1x128xf32, #tpu.memory_space<vmem>>, %arg12: memref<1x1x128xf32, #tpu.memory_space<vmem>>, %arg13: memref<1x1x128xf32, #tpu.memory_space<vmem>>, %arg14: memref<1x128x256xf32, #tpu.memory_space<vmem>>, %arg15: memref<1x1x256xf32, #tpu.memory_space<vmem>>, %arg16: memref<1x256x128xf32, #tpu.memory_space<vmem>>, %arg17: memref<1x1x128xf32, #tpu.memory_space<vmem>>, %arg18: memref<1x1x128xf32, #tpu.memory_space<vmem>>, %arg19: memref<1x1x128xf32, #tpu.memory_space<vmem>>, %arg20: memref<1x8x128xf32, #tpu.memory_space<vmem>>) attributes {dimension_semantics = [#tpu.dimension_semantics<parallel>, #tpu.dimension_semantics<arbitrary>], iteration_bounds = array<i64: 2, 2>, scalar_prefetch = 1 : i64, scratch_operands = 0 : i64, tpu.core_type = #tpu.core_type<tc>, window_params = [{transform_indices = @transform_0, window_bounds = array<i64: 1, 8, 128>}, {transform_indices = @transform_1, window_bounds = array<i64: 1, 4, 128, 32>}, {transform_indices = @transform_2, window_bounds = array<i64: 1, 4, 1, 32>}, {transform_indices = @transform_3, window_bounds = array<i64: 1, 4, 128, 32>}, {transform_indices = @transform_4, window_bounds = array<i64: 1, 4, 1, 32>}, {transform_indices = @transform_5, window_bounds = array<i64: 1, 4, 128, 32>}, {transform_indices = @transform_6, window_bounds = array<i64: 1, 4, 1, 32>}, {transform_indices = @transform_7, window_bounds = array<i64: 1, 4, 32, 128>}, {transform_indices = @transform_8, window_bounds = array<i64: 1, 1, 128>}, {transform_indices = @transform_9, window_bounds = array<i64: 1, 1, 128>}, {transform_indices = @transform_10, window_bounds = array<i64: 1, 1, 128>}, {transform_indices = @transform_11, window_bounds = array<i64: 1, 128, 256>}, {transform_indices = @transform_12, window_bounds = array<i64: 1, 1, 256>}, {transform_indices = @transform_13, window_bounds = array<i64: 1, 256, 128>}, {transform_indices = @transform_14, window_bounds = array<i64: 1, 1, 128>}, {transform_indices = @transform_15, window_bounds = array<i64: 1, 1, 128>}, {transform_indices = @transform_16, window_bounds = array<i64: 1, 1, 128>}, {transform_indices = @transform_17, window_bounds = array<i64: 1, 8, 128>}]} {
    %c0_i32 = arith.constant 0 : i32
    %0 = arith.cmpi eq, %arg1, %c0_i32 : i32
    %1 = arith.extui %0 : i1 to i32
    %c0_i32_0 = arith.constant 0 : i32
    %2 = arith.cmpi ne, %1, %c0_i32_0 : i32
    scf.if %2 {
      %c0_84 = arith.constant 0 : index
      %c0_85 = arith.constant 0 : index
      %c0_86 = arith.constant 0 : index
      %133 = vector.load %arg3[%c0_84, %c0_85, %c0_86] : memref<1x8x128xf32, #tpu.memory_space<vmem>>, vector<1x8x128xf32>
      %134 = vector.shape_cast %133 : vector<1x8x128xf32> to vector<8x128xf32>
      %c0_87 = arith.constant 0 : index
      %c0_88 = arith.constant 0 : index
      %c0_89 = arith.constant 0 : index
      %135 = vector.load %arg20[%c0_87, %c0_88, %c0_89] : memref<1x8x128xf32, #tpu.memory_space<vmem>>, vector<1x8x128xf32>
      %136 = vector.shape_cast %135 : vector<1x8x128xf32> to vector<8x128xf32>
      %137 = vector.shape_cast %134 : vector<8x128xf32> to vector<1x8x128xf32>
      tpu.vector_store %arg20[%c0_87, %c0_88, %c0_89], %137 {strides = array<i32>} : memref<1x8x128xf32, #tpu.memory_space<vmem>>, vector<1x8x128xf32>,
    } else {
    }
    %c0 = arith.constant 0 : index
    %c0_1 = arith.constant 0 : index
    %c0_2 = arith.constant 0 : index
    %3 = vector.load %arg20[%c0, %c0_1, %c0_2] : memref<1x8x128xf32, #tpu.memory_space<vmem>>, vector<1x8x128xf32>
    %4 = vector.shape_cast %3 : vector<1x8x128xf32> to vector<8x128xf32>
    %5 = arith.index_cast %arg0 : i32 to index
    %6 = memref.load %arg2[%5] : memref<2xi32, #tpu.memory_space<smem>>
    %7 = tpu.iota {dimensions = array<i32: 2>} : vector<1x8x8xi32>
    %8 = vector.broadcast %6 : i32 to vector<1x8x8xi32>
    %9 = arith.cmpi slt, %7, %8 : vector<1x8x8xi32>
    %10 = vector.shape_cast %4 : vector<8x128xf32> to vector<1x8x128xf32>
    %11 = vector.shape_cast %10 : vector<1x8x128xf32> to vector<1x8x128xf32>
    %12 = vector.broadcast %11 : vector<1x8x128xf32> to vector<4x8x128xf32>
    %c0_3 = arith.constant 0 : index
    %c0_4 = arith.constant 0 : index
    %c0_5 = arith.constant 0 : index
    %c0_6 = arith.constant 0 : index
    %13 = vector.load %arg4[%c0_3, %c0_4, %c0_5, %c0_6] : memref<1x4x128x32xf32, #tpu.memory_space<vmem>>, vector<1x4x128x32xf32>
    %14 = vector.shape_cast %13 : vector<1x4x128x32xf32> to vector<4x128x32xf32>
    "tpu.trace_start"() <{level = 10 : i32, message = "hse,hed->hsd"}> : () -> ()
    %cst = arith.constant dense<0.000000e+00> : vector<4x8x32xf32>
    %15 = tpu.matmul %12, %14, %cst {dimension_numbers = #tpu.dot_dimension_numbers<[2], [1], [1], [2], [0, 0, 0, 1, 1, 2], [0], [0]>} : vector<4x8x128xf32>, vector<4x128x32xf32>, vector<4x8x32xf32> -> vector<4x8x32xf32>
    "tpu.trace_stop"() : () -> ()
    %c0_7 = arith.constant 0 : index
    %c0_8 = arith.constant 0 : index
    %c0_9 = arith.constant 0 : index
    %c0_10 = arith.constant 0 : index
    %16 = vector.load %arg5[%c0_7, %c0_8, %c0_9, %c0_10] : memref<1x4x1x32xf32, #tpu.memory_space<vmem>>, vector<1x4x1x32xf32>
    %17 = vector.shape_cast %16 : vector<1x4x1x32xf32> to vector<4x1x32xf32>
    %18 = vector.broadcast %17 : vector<4x1x32xf32> to vector<4x8x32xf32>
    %19 = arith.addf %15, %18 : vector<4x8x32xf32>
    %c0_11 = arith.constant 0 : index
    %c0_12 = arith.constant 0 : index
    %c0_13 = arith.constant 0 : index
    %c0_14 = arith.constant 0 : index
    %20 = vector.load %arg6[%c0_11, %c0_12, %c0_13, %c0_14] : memref<1x4x128x32xf32, #tpu.memory_space<vmem>>, vector<1x4x128x32xf32>
    %21 = vector.shape_cast %20 : vector<1x4x128x32xf32> to vector<4x128x32xf32>
    "tpu.trace_start"() <{level = 10 : i32, message = "hse,hed->hsd"}> : () -> ()
    %cst_15 = arith.constant dense<0.000000e+00> : vector<4x8x32xf32>
    %22 = tpu.matmul %12, %21, %cst_15 {dimension_numbers = #tpu.dot_dimension_numbers<[2], [1], [1], [2], [0, 0, 0, 1, 1, 2], [0], [0]>} : vector<4x8x128xf32>, vector<4x128x32xf32>, vector<4x8x32xf32> -> vector<4x8x32xf32>
    "tpu.trace_stop"() : () -> ()
    %c0_16 = arith.constant 0 : index
    %c0_17 = arith.constant 0 : index
    %c0_18 = arith.constant 0 : index
    %c0_19 = arith.constant 0 : index
    %23 = vector.load %arg7[%c0_16, %c0_17, %c0_18, %c0_19] : memref<1x4x1x32xf32, #tpu.memory_space<vmem>>, vector<1x4x1x32xf32>
    %24 = vector.shape_cast %23 : vector<1x4x1x32xf32> to vector<4x1x32xf32>
    %25 = vector.broadcast %24 : vector<4x1x32xf32> to vector<4x8x32xf32>
    %26 = arith.addf %22, %25 : vector<4x8x32xf32>
    %c0_20 = arith.constant 0 : index
    %c0_21 = arith.constant 0 : index
    %c0_22 = arith.constant 0 : index
    %c0_23 = arith.constant 0 : index
    %27 = vector.load %arg8[%c0_20, %c0_21, %c0_22, %c0_23] : memref<1x4x128x32xf32, #tpu.memory_space<vmem>>, vector<1x4x128x32xf32>
    %28 = vector.shape_cast %27 : vector<1x4x128x32xf32> to vector<4x128x32xf32>
    "tpu.trace_start"() <{level = 10 : i32, message = "hse,hed->hsd"}> : () -> ()
    %cst_24 = arith.constant dense<0.000000e+00> : vector<4x8x32xf32>
    %29 = tpu.matmul %12, %28, %cst_24 {dimension_numbers = #tpu.dot_dimension_numbers<[2], [1], [1], [2], [0, 0, 0, 1, 1, 2], [0], [0]>} : vector<4x8x128xf32>, vector<4x128x32xf32>, vector<4x8x32xf32> -> vector<4x8x32xf32>
    "tpu.trace_stop"() : () -> ()
    %c0_25 = arith.constant 0 : index
    %c0_26 = arith.constant 0 : index
    %c0_27 = arith.constant 0 : index
    %c0_28 = arith.constant 0 : index
    %30 = vector.load %arg9[%c0_25, %c0_26, %c0_27, %c0_28] : memref<1x4x1x32xf32, #tpu.memory_space<vmem>>, vector<1x4x1x32xf32>
    %31 = vector.shape_cast %30 : vector<1x4x1x32xf32> to vector<4x1x32xf32>
    %32 = vector.broadcast %31 : vector<4x1x32xf32> to vector<4x8x32xf32>
    %33 = arith.addf %29, %32 : vector<4x8x32xf32>
    "tpu.trace_start"() <{level = 10 : i32, message = "hqd,hkd->hqk"}> : () -> ()
    %cst_29 = arith.constant dense<0.000000e+00> : vector<4x8x8xf32>
    %34 = tpu.matmul %19, %26, %cst_29 {dimension_numbers = #tpu.dot_dimension_numbers<[2], [2], [1], [1], [0, 0, 0, 1, 1, 1], [0], [0]>} : vector<4x8x32xf32>, vector<4x8x32xf32>, vector<4x8x8xf32> -> vector<4x8x8xf32>
    "tpu.trace_stop"() : () -> ()
    %cst_30 = arith.constant 0.176776692 : f32
    %35 = vector.broadcast %cst_30 : f32 to vector<4x8x8xf32>
    %36 = arith.mulf %34, %35 : vector<4x8x8xf32>
    %cst_31 = arith.constant -1.000000e+09 : f32
    %37 = vector.shape_cast %9 : vector<1x8x8xi1> to vector<1x8x8xi1>
    %38 = vector.broadcast %37 : vector<1x8x8xi1> to vector<4x8x8xi1>
    %39 = vector.broadcast %cst_31 : f32 to vector<4x8x8xf32>
    %40 = arith.select %38, %36, %39 : vector<4x8x8xi1>, vector<4x8x8xf32>
    %cst_32 = arith.constant dense<0xFF800000> : vector<4x8xf32>
    %41 = vector.multi_reduction <maximumf>, %40, %cst_32 [2] : vector<4x8x8xf32> to vector<4x8xf32>
    %42 = vector.shape_cast %41 : vector<4x8xf32> to vector<4x8x1xf32>
    %43 = vector.broadcast %42 : vector<4x8x1xf32> to vector<4x8x8xf32>
    %44 = arith.subf %40, %43 : vector<4x8x8xf32>
    %45 = math.exp %44 : vector<4x8x8xf32>
    %cst_33 = arith.constant dense<0.000000e+00> : vector<4x8xf32>
    %46 = vector.multi_reduction <add>, %45, %cst_33 [2] : vector<4x8x8xf32> to vector<4x8xf32>
    %47 = vector.shape_cast %46 : vector<4x8xf32> to vector<4x8x1xf32>
    %48 = tpu.reciprocal %47 {approx = true} : vector<4x8x1xf32> -> vector<4x8x1xf32>
    %49 = vector.broadcast %48 : vector<4x8x1xf32> to vector<4x8x8xf32>
    %50 = arith.mulf %45, %49 : vector<4x8x8xf32>
    "tpu.trace_start"() <{level = 10 : i32, message = "hqk,hkd->hqd"}> : () -> ()
    %cst_34 = arith.constant dense<0.000000e+00> : vector<4x8x32xf32>
    %51 = tpu.matmul %50, %33, %cst_34 {dimension_numbers = #tpu.dot_dimension_numbers<[2], [1], [1], [2], [0, 0, 0, 1, 1, 2], [0], [0]>} : vector<4x8x8xf32>, vector<4x8x32xf32>, vector<4x8x32xf32> -> vector<4x8x32xf32>
    "tpu.trace_stop"() : () -> ()
    %c0_35 = arith.constant 0 : index
    %c0_36 = arith.constant 0 : index
    %c0_37 = arith.constant 0 : index
    %c0_38 = arith.constant 0 : index
    %52 = vector.load %arg10[%c0_35, %c0_36, %c0_37, %c0_38] : memref<1x4x32x128xf32, #tpu.memory_space<vmem>>, vector<1x4x32x128xf32>
    %53 = vector.shape_cast %52 : vector<1x4x32x128xf32> to vector<4x32x128xf32>
    "tpu.trace_start"() <{level = 10 : i32, message = "hqd,hde->hqe"}> : () -> ()
    %cst_39 = arith.constant dense<0.000000e+00> : vector<4x8x128xf32>
    %54 = tpu.matmul %51, %53, %cst_39 {dimension_numbers = #tpu.dot_dimension_numbers<[2], [1], [1], [2], [0, 0, 0, 1, 1, 2], [0], [0]>} : vector<4x8x32xf32>, vector<4x32x128xf32>, vector<4x8x128xf32> -> vector<4x8x128xf32>
    "tpu.trace_stop"() : () -> ()
    %cst_40 = arith.constant dense<0.000000e+00> : vector<8x128xf32>
    %55 = vector.multi_reduction <add>, %54, %cst_40 [0] : vector<4x8x128xf32> to vector<8x128xf32>
    %c0_41 = arith.constant 0 : index
    %c0_42 = arith.constant 0 : index
    %c0_43 = arith.constant 0 : index
    %56 = vector.load %arg11[%c0_41, %c0_42, %c0_43] : memref<1x1x128xf32, #tpu.memory_space<vmem>>, vector<1x1x128xf32>
    %57 = vector.shape_cast %56 : vector<1x1x128xf32> to vector<1x128xf32>
    %58 = vector.broadcast %57 : vector<1x128xf32> to vector<8x128xf32>
    %59 = arith.addf %55, %58 : vector<8x128xf32>
    %60 = arith.addf %4, %59 : vector<8x128xf32>
    %cst_44 = arith.constant dense<0.000000e+00> : vector<8xf32>
    %61 = vector.multi_reduction <add>, %60, %cst_44 [1] : vector<8x128xf32> to vector<8xf32>
    %62 = vector.shape_cast %61 : vector<8xf32> to vector<8x1xf32>
    %cst_45 = arith.constant 1.280000e+02 : f32
    %63 = vector.broadcast %cst_45 : f32 to vector<8x1xf32>
    %64 = arith.divf %62, %63 : vector<8x1xf32>
    %65 = vector.broadcast %64 : vector<8x1xf32> to vector<8x128xf32>
    %66 = arith.subf %60, %65 : vector<8x128xf32>
    %67 = arith.mulf %66, %66 : vector<8x128xf32>
    %cst_46 = arith.constant dense<0.000000e+00> : vector<8xf32>
    %68 = vector.multi_reduction <add>, %67, %cst_46 [1] : vector<8x128xf32> to vector<8xf32>
    %69 = vector.shape_cast %68 : vector<8xf32> to vector<8x1xf32>
    %cst_47 = arith.constant 1.280000e+02 : f32
    %70 = vector.broadcast %cst_47 : f32 to vector<8x1xf32>
    %71 = arith.divf %69, %70 : vector<8x1xf32>
    %72 = vector.broadcast %64 : vector<8x1xf32> to vector<8x128xf32>
    %73 = arith.subf %60, %72 : vector<8x128xf32>
    %cst_48 = arith.constant 9.99999974E-6 : f32
    %74 = vector.broadcast %cst_48 : f32 to vector<8x1xf32>
    %75 = arith.addf %71, %74 : vector<8x1xf32>
    %76 = math.rsqrt %75 : vector<8x1xf32>
    %77 = vector.broadcast %76 : vector<8x1xf32> to vector<8x128xf32>
    %78 = arith.mulf %73, %77 : vector<8x128xf32>
    %c0_49 = arith.constant 0 : index
    %c0_50 = arith.constant 0 : index
    %c0_51 = arith.constant 0 : index
    %79 = vector.load %arg12[%c0_49, %c0_50, %c0_51] : memref<1x1x128xf32, #tpu.memory_space<vmem>>, vector<1x1x128xf32>
    %80 = vector.shape_cast %79 : vector<1x1x128xf32> to vector<1x128xf32>
    %81 = vector.broadcast %80 : vector<1x128xf32> to vector<8x128xf32>
    %82 = arith.mulf %78, %81 : vector<8x128xf32>
    %c0_52 = arith.constant 0 : index
    %c0_53 = arith.constant 0 : index
    %c0_54 = arith.constant 0 : index
    %83 = vector.load %arg13[%c0_52, %c0_53, %c0_54] : memref<1x1x128xf32, #tpu.memory_space<vmem>>, vector<1x1x128xf32>
    %84 = vector.shape_cast %83 : vector<1x1x128xf32> to vector<1x128xf32>
    %85 = vector.broadcast %84 : vector<1x128xf32> to vector<8x128xf32>
    %86 = arith.addf %82, %85 : vector<8x128xf32>
    %c0_55 = arith.constant 0 : index
    %c0_56 = arith.constant 0 : index
    %c0_57 = arith.constant 0 : index
    %87 = vector.load %arg14[%c0_55, %c0_56, %c0_57] : memref<1x128x256xf32, #tpu.memory_space<vmem>>, vector<1x128x256xf32>
    %88 = vector.shape_cast %87 : vector<1x128x256xf32> to vector<128x256xf32>
    %cst_58 = arith.constant dense<0.000000e+00> : vector<8x256xf32>
    %89 = tpu.matmul %86, %88, %cst_58 {dimension_numbers = #tpu.dot_dimension_numbers<[1], [0], [0], [1], [0, 0, 1, 1], [], []>} : vector<8x128xf32>, vector<128x256xf32>, vector<8x256xf32> -> vector<8x256xf32>
    %c0_59 = arith.constant 0 : index
    %c0_60 = arith.constant 0 : index
    %c0_61 = arith.constant 0 : index
    %90 = vector.load %arg15[%c0_59, %c0_60, %c0_61] : memref<1x1x256xf32, #tpu.memory_space<vmem>>, vector<1x1x256xf32>
    %91 = vector.shape_cast %90 : vector<1x1x256xf32> to vector<1x256xf32>
    %92 = vector.broadcast %91 : vector<1x256xf32> to vector<8x256xf32>
    %93 = arith.addf %89, %92 : vector<8x256xf32>
    %cst_62 = arith.constant 0.000000e+00 : f32
    %94 = vector.broadcast %cst_62 : f32 to vector<8x256xf32>
    %95 = arith.maximumf %93, %94 : vector<8x256xf32>
    %c0_63 = arith.constant 0 : index
    %c0_64 = arith.constant 0 : index
    %c0_65 = arith.constant 0 : index
    %96 = vector.load %arg16[%c0_63, %c0_64, %c0_65] : memref<1x256x128xf32, #tpu.memory_space<vmem>>, vector<1x256x128xf32>
    %97 = vector.shape_cast %96 : vector<1x256x128xf32> to vector<256x128xf32>
    %cst_66 = arith.constant dense<0.000000e+00> : vector<8x128xf32>
    %98 = tpu.matmul %95, %97, %cst_66 {dimension_numbers = #tpu.dot_dimension_numbers<[1], [0], [0], [1], [0, 0, 1, 1], [], []>} : vector<8x256xf32>, vector<256x128xf32>, vector<8x128xf32> -> vector<8x128xf32>
    %c0_67 = arith.constant 0 : index
    %c0_68 = arith.constant 0 : index
    %c0_69 = arith.constant 0 : index
    %99 = vector.load %arg17[%c0_67, %c0_68, %c0_69] : memref<1x1x128xf32, #tpu.memory_space<vmem>>, vector<1x1x128xf32>
    %100 = vector.shape_cast %99 : vector<1x1x128xf32> to vector<1x128xf32>
    %101 = vector.broadcast %100 : vector<1x128xf32> to vector<8x128xf32>
    %102 = arith.addf %98, %101 : vector<8x128xf32>
    %103 = arith.addf %86, %102 : vector<8x128xf32>
    %cst_70 = arith.constant dense<0.000000e+00> : vector<8xf32>
    %104 = vector.multi_reduction <add>, %103, %cst_70 [1] : vector<8x128xf32> to vector<8xf32>
    %105 = vector.shape_cast %104 : vector<8xf32> to vector<8x1xf32>
    %cst_71 = arith.constant 1.280000e+02 : f32
    %106 = vector.broadcast %cst_71 : f32 to vector<8x1xf32>
    %107 = arith.divf %105, %106 : vector<8x1xf32>
    %108 = vector.broadcast %107 : vector<8x1xf32> to vector<8x128xf32>
    %109 = arith.subf %103, %108 : vector<8x128xf32>
    %110 = arith.mulf %109, %109 : vector<8x128xf32>
    %cst_72 = arith.constant dense<0.000000e+00> : vector<8xf32>
    %111 = vector.multi_reduction <add>, %110, %cst_72 [1] : vector<8x128xf32> to vector<8xf32>
    %112 = vector.shape_cast %111 : vector<8xf32> to vector<8x1xf32>
    %cst_73 = arith.constant 1.280000e+02 : f32
    %113 = vector.broadcast %cst_73 : f32 to vector<8x1xf32>
    %114 = arith.divf %112, %113 : vector<8x1xf32>
    %115 = vector.broadcast %107 : vector<8x1xf32> to vector<8x128xf32>
    %116 = arith.subf %103, %115 : vector<8x128xf32>
    %cst_74 = arith.constant 9.99999974E-6 : f32
    %117 = vector.broadcast %cst_74 : f32 to vector<8x1xf32>
    %118 = arith.addf %114, %117 : vector<8x1xf32>
    %119 = math.rsqrt %118 : vector<8x1xf32>
    %120 = vector.broadcast %119 : vector<8x1xf32> to vector<8x128xf32>
    %121 = arith.mulf %116, %120 : vector<8x128xf32>
    %c0_75 = arith.constant 0 : index
    %c0_76 = arith.constant 0 : index
    %c0_77 = arith.constant 0 : index
    %122 = vector.load %arg18[%c0_75, %c0_76, %c0_77] : memref<1x1x128xf32, #tpu.memory_space<vmem>>, vector<1x1x128xf32>
    %123 = vector.shape_cast %122 : vector<1x1x128xf32> to vector<1x128xf32>
    %124 = vector.broadcast %123 : vector<1x128xf32> to vector<8x128xf32>
    %125 = arith.mulf %121, %124 : vector<8x128xf32>
    %c0_78 = arith.constant 0 : index
    %c0_79 = arith.constant 0 : index
    %c0_80 = arith.constant 0 : index
    %126 = vector.load %arg19[%c0_78, %c0_79, %c0_80] : memref<1x1x128xf32, #tpu.memory_space<vmem>>, vector<1x1x128xf32>
    %127 = vector.shape_cast %126 : vector<1x1x128xf32> to vector<1x128xf32>
    %128 = vector.broadcast %127 : vector<1x128xf32> to vector<8x128xf32>
    %129 = arith.addf %125, %128 : vector<8x128xf32>
    %c0_81 = arith.constant 0 : index
    %c0_82 = arith.constant 0 : index
    %c0_83 = arith.constant 0 : index
    %130 = vector.load %arg20[%c0_81, %c0_82, %c0_83] : memref<1x8x128xf32, #tpu.memory_space<vmem>>, vector<1x8x128xf32>
    %131 = vector.shape_cast %130 : vector<1x8x128xf32> to vector<8x128xf32>
    %132 = vector.shape_cast %129 : vector<8x128xf32> to vector<1x8x128xf32>
    tpu.vector_store %arg20[%c0_81, %c0_82, %c0_83], %132 {strides = array<i32>} : memref<1x8x128xf32, #tpu.memory_space<vmem>>, vector<1x8x128xf32>,
    return
  }
  func.func @transform_0(%arg0: i32, %arg1: i32, %arg2: memref<2xi32, #tpu.memory_space<smem>>) -> (i32, i32, i32) {
    %c0_i32 = arith.constant 0 : i32
    %c0_i32_0 = arith.constant 0 : i32
    %c0_i32_1 = arith.constant 0 : i32
    return %arg0, %c0_i32, %c0_i32_0 : i32, i32, i32
  }
  func.func @transform_1(%arg0: i32, %arg1: i32, %arg2: memref<2xi32, #tpu.memory_space<smem>>) -> (i32, i32, i32, i32) {
    %c0_i32 = arith.constant 0 : i32
    %c0_i32_0 = arith.constant 0 : i32
    %c0_i32_1 = arith.constant 0 : i32
    %c0_i32_2 = arith.constant 0 : i32
    return %arg1, %c0_i32, %c0_i32_0, %c0_i32_1 : i32, i32, i32, i32
  }
  func.func @transform_2(%arg0: i32, %arg1: i32, %arg2: memref<2xi32, #tpu.memory_space<smem>>) -> (i32, i32, i32, i32) {
    %c0_i32 = arith.constant 0 : i32
    %c0_i32_0 = arith.constant 0 : i32
    %c0_i32_1 = arith.constant 0 : i32
    %c0_i32_2 = arith.constant 0 : i32
    return %arg1, %c0_i32, %c0_i32_0, %c0_i32_1 : i32, i32, i32, i32
  }
  func.func @transform_3(%arg0: i32, %arg1: i32, %arg2: memref<2xi32, #tpu.memory_space<smem>>) -> (i32, i32, i32, i32) {
    %c0_i32 = arith.constant 0 : i32
    %c0_i32_0 = arith.constant 0 : i32
    %c0_i32_1 = arith.constant 0 : i32
    %c0_i32_2 = arith.constant 0 : i32
    return %arg1, %c0_i32, %c0_i32_0, %c0_i32_1 : i32, i32, i32, i32
  }
  func.func @transform_4(%arg0: i32, %arg1: i32, %arg2: memref<2xi32, #tpu.memory_space<smem>>) -> (i32, i32, i32, i32) {
    %c0_i32 = arith.constant 0 : i32
    %c0_i32_0 = arith.constant 0 : i32
    %c0_i32_1 = arith.constant 0 : i32
    %c0_i32_2 = arith.constant 0 : i32
    return %arg1, %c0_i32, %c0_i32_0, %c0_i32_1 : i32, i32, i32, i32
  }
  func.func @transform_5(%arg0: i32, %arg1: i32, %arg2: memref<2xi32, #tpu.memory_space<smem>>) -> (i32, i32, i32, i32) {
    %c0_i32 = arith.constant 0 : i32
    %c0_i32_0 = arith.constant 0 : i32
    %c0_i32_1 = arith.constant 0 : i32
    %c0_i32_2 = arith.constant 0 : i32
    return %arg1, %c0_i32, %c0_i32_0, %c0_i32_1 : i32, i32, i32, i32
  }
  func.func @transform_6(%arg0: i32, %arg1: i32, %arg2: memref<2xi32, #tpu.memory_space<smem>>) -> (i32, i32, i32, i32) {
    %c0_i32 = arith.constant 0 : i32
    %c0_i32_0 = arith.constant 0 : i32
    %c0_i32_1 = arith.constant 0 : i32
    %c0_i32_2 = arith.constant 0 : i32
    return %arg1, %c0_i32, %c0_i32_0, %c0_i32_1 : i32, i32, i32, i32
  }
  func.func @transform_7(%arg0: i32, %arg1: i32, %arg2: memref<2xi32, #tpu.memory_space<smem>>) -> (i32, i32, i32, i32) {
    %c0_i32 = arith.constant 0 : i32
    %c0_i32_0 = arith.constant 0 : i32
    %c0_i32_1 = arith.constant 0 : i32
    %c0_i32_2 = arith.constant 0 : i32
    return %arg1, %c0_i32, %c0_i32_0, %c0_i32_1 : i32, i32, i32, i32
  }
  func.func @transform_8(%arg0: i32, %arg1: i32, %arg2: memref<2xi32, #tpu.memory_space<smem>>) -> (i32, i32, i32) {
    %c0_i32 = arith.constant 0 : i32
    %c0_i32_0 = arith.constant 0 : i32
    %c0_i32_1 = arith.constant 0 : i32
    return %arg1, %c0_i32, %c0_i32_0 : i32, i32, i32
  }
  func.func @transform_9(%arg0: i32, %arg1: i32, %arg2: memref<2xi32, #tpu.memory_space<smem>>) -> (i32, i32, i32) {
    %c0_i32 = arith.constant 0 : i32
    %c0_i32_0 = arith.constant 0 : i32
    %c0_i32_1 = arith.constant 0 : i32
    return %arg1, %c0_i32, %c0_i32_0 : i32, i32, i32
  }
  func.func @transform_10(%arg0: i32, %arg1: i32, %arg2: memref<2xi32, #tpu.memory_space<smem>>) -> (i32, i32, i32) {
    %c0_i32 = arith.constant 0 : i32
    %c0_i32_0 = arith.constant 0 : i32
    %c0_i32_1 = arith.constant 0 : i32
    return %arg1, %c0_i32, %c0_i32_0 : i32, i32, i32
  }
  func.func @transform_11(%arg0: i32, %arg1: i32, %arg2: memref<2xi32, #tpu.memory_space<smem>>) -> (i32, i32, i32) {
    %c0_i32 = arith.constant 0 : i32
    %c0_i32_0 = arith.constant 0 : i32
    %c0_i32_1 = arith.constant 0 : i32
    return %arg1, %c0_i32, %c0_i32_0 : i32, i32, i32
  }
  func.func @transform_12(%arg0: i32, %arg1: i32, %arg2: memref<2xi32, #tpu.memory_space<smem>>) -> (i32, i32, i32) {
    %c0_i32 = arith.constant 0 : i32
    %c0_i32_0 = arith.constant 0 : i32
    %c0_i32_1 = arith.constant 0 : i32
    return %arg1, %c0_i32, %c0_i32_0 : i32, i32, i32
  }
  func.func @transform_13(%arg0: i32, %arg1: i32, %arg2: memref<2xi32, #tpu.memory_space<smem>>) -> (i32, i32, i32) {
    %c0_i32 = arith.constant 0 : i32
    %c0_i32_0 = arith.constant 0 : i32
    %c0_i32_1 = arith.constant 0 : i32
    return %arg1, %c0_i32, %c0_i32_0 : i32, i32, i32
  }
  func.func @transform_14(%arg0: i32, %arg1: i32, %arg2: memref<2xi32, #tpu.memory_space<smem>>) -> (i32, i32, i32) {
    %c0_i32 = arith.constant 0 : i32
    %c0_i32_0 = arith.constant 0 : i32
    %c0_i32_1 = arith.constant 0 : i32
    return %arg1, %c0_i32, %c0_i32_0 : i32, i32, i32
  }
  func.func @transform_15(%arg0: i32, %arg1: i32, %arg2: memref<2xi32, #tpu.memory_space<smem>>) -> (i32, i32, i32) {
    %c0_i32 = arith.constant 0 : i32
    %c0_i32_0 = arith.constant 0 : i32
    %c0_i32_1 = arith.constant 0 : i32
    return %arg1, %c0_i32, %c0_i32_0 : i32, i32, i32
  }
  func.func @transform_16(%arg0: i32, %arg1: i32, %arg2: memref<2xi32, #tpu.memory_space<smem>>) -> (i32, i32, i32) {
    %c0_i32 = arith.constant 0 : i32
    %c0_i32_0 = arith.constant 0 : i32
    %c0_i32_1 = arith.constant 0 : i32
    return %arg1, %c0_i32, %c0_i32_0 : i32, i32, i32
  }
  func.func @transform_17(%arg0: i32, %arg1: i32, %arg2: memref<2xi32, #tpu.memory_space<smem>>) -> (i32, i32, i32) {
    %c0_i32 = arith.constant 0 : i32
    %c0_i32_0 = arith.constant 0 : i32
    %c0_i32_1 = arith.constant 0 : i32
    return %arg0, %c0_i32, %c0_i32_0 : i32, i32, i32
  }
}

</mosaic_0001>

<bundles_post_ra>
// kernel: tpu_custom_call.1
= control target key start
LH: loop header
LB: loop body
LE: loop exit
PB: predicated region body
PF: predicated region fallthrough
CT: control target
= control target key end

     0   :  { %s5486_s0 = inlined_call_operand.vmem [shape: s32[2], index: 0, kind: input, shape index: {}]   ;;  %s5487_s1 = inlined_call_operand.vmem [shape: f32[2,8,128], index: 1, kind: input, shape index: {}]   ;;  %s5488_s2 = inlined_call_operand.vmem [shape: f32[2,4,128,32], index: 2, kind: input, shape index: {}]   ;;  %s5489_s3 = inlined_call_operand.vmem [shape: f32[2,4,1,32], index: 3, kind: input, shape index: {}]   ;;  %s5490_s4 = inlined_call_operand.vmem [shape: f32[2,4,128,32], index: 4, kind: input, shape index: {}]   ;;  %s5491_s5 = inlined_call_operand.vmem [shape: f32[2,4,1,32], index: 5, kind: input, shape index: {}]   ;;  %s5492_s6 = inlined_call_operand.vmem [shape: f32[2,4,128,32], index: 6, kind: input, shape index: {}]   ;;  %s5493_s7 = inlined_call_operand.vmem [shape: f32[2,4,1,32], index: 7, kind: input, shape index: {}]   ;;  %s5494_s8 = inlined_call_operand.vmem [shape: f32[2,4,32,128], index: 8, kind: input, shape index: {}]   ;;  %s5495_s9 = inlined_call_operand.vmem [shape: f32[2,1,128], index: 9, kind: input, shape index: {}]   ;;  %s5496_s10 = inlined_call_operand.vmem [shape: f32[2,1,128], index: 10, kind: input, shape index: {}]   ;;  %s5497_s11 = inlined_call_operand.vmem [shape: f32[2,1,128], index: 11, kind: input, shape index: {}]   ;;  %s5498_s12 = inlined_call_operand.vmem [shape: f32[2,128,256], index: 12, kind: input, shape index: {}]   ;;  %s5499_s13 = inlined_call_operand.vmem [shape: f32[2,1,256], index: 13, kind: input, shape index: {}]   ;;  %s5500_s14 = inlined_call_operand.vmem [shape: f32[2,256,128], index: 14, kind: input, shape index: {}]   ;;  %s5501_s15 = inlined_call_operand.vmem [shape: f32[2,1,128], index: 15, kind: input, shape index: {}]   ;;  %s5502_s16 = inlined_call_operand.vmem [shape: f32[2,1,128], index: 16, kind: input, shape index: {}]   ;;  %s5503_s17 = inlined_call_operand.vmem [shape: f32[2,1,128], index: 17, kind: input, shape index: {}]   ;;  %s5504_s18 = inlined_call_operand.hbm [shape: f32[2,8,128], index: 18, kind: output, shape index: {}]  }
   0x1   :  { %5525 = sst [smem:[#allocation25_spill]] %s5486_s0 }
   0x2   :  { %5526 = sst [smem:[#allocation26_spill]] %s5487_s1 }
   0x3   :  { %5527 = sst [smem:[#allocation27_spill]] %s5488_s2 }
   0x4   :  { %5528 = sst [smem:[#allocation28_spill]] %s5489_s3 }
   0x5   :  { %5529 = sst [smem:[#allocation29_spill]] %s5490_s4 }
   0x6   :  { %5530 = sst [smem:[#allocation30_spill]] %s5491_s5 }
   0x7   :  { %5531 = sst [smem:[#allocation31_spill]] %s5492_s6 }
   0x8   :  { %5532 = sst [smem:[#allocation32_spill]] %s5493_s7 }
   0x9   :  { %5533 = sst [smem:[#allocation33_spill]] %s5494_s8 }
   0xa   :  { %5534 = sst [smem:[#allocation34_spill]] %s5497_s11 }
   0xb   :  { %5535 = sst [smem:[#allocation35_spill]] %s5498_s12 }
   0xc   :  { %5536 = sst [smem:[#allocation36_spill]] %s5503_s17 }
   0xd   :  { %5537 = sst [smem:[#allocation37_spill]] %s5504_s18 }
   0xe   :  { %s5538_s29 = sld [smem:[#allocation25_spill]] }
  0x14   :  { %s23_s12 = sshll.u32 %s5538_s29, 4  ;;  %s24_s12 = int_to_ptr.vmem [resolvable:$true] %s23_s12 }
  0x15   :  { %s4418_s30 = scalar_lea.vmem %s24_s12, 16  ;;  %p4423_p1 = scmp.lt.s32.totalorder %s24_s12, %s24_s12 }
  0x16   :  { %p4419_p0 = scmp.ne.s32.totalorder %s24_s12, %s4418_s30  ;;  %p4424_p2 = scmp.lt.s32.totalorder %s4418_s30, %s4418_s30 }
  0x18   :  { %p4425_p3 = por %p4424_p2, %p4423_p1 }
  0x1a   :  { %p4426_p4 = pnand %p4425_p3, %p4419_p0 }
  0x1c   :  { %4429 = shalt.err (!%p4426_p4)  }
  0x1d   :  { %s4526_s0 = smov [#allocation3]  }
  0x1e   :  { %26 = dma.vmem_to_smem %s24_s12, 16, %s4526_s0, [#allocation2] }
  0x1f   :  { %4488 = dma.done.wait [#allocation2], 16 }
  0x20   :  { %4489 = vsyncadd [#allocation2], 4294967280 }
  0x21   :  { %28 = sfence }
  0x22   :  { %29 = vsyncpa [#allocation5], 0 }
  0x23   :  { %31 = vsyncpa [#allocation5 + $0x1], 0  ;;  %s4628_s19 = smov 0   ;;  %s4630_s1 = smov 0  }
  0x24   :  { %s4632_s20 = smov 0   ;;  %s4634_s21 = smov 0  }
  0x25   :  { %s4636_s22 = smov 0   ;;  %s4638_s2 = smov 0  }
  0x26   :  { %s4640_s23 = smov 0   ;;  %s4642_s12 = smov 0  }
  0x27 LB: > { %5539 = sst [smem:[#allocation8_spill]] %s4496_s19  ;;  %s3476_s24 = sadd.s32 4294967295, %s4524_s12   ;;  %s4524_s12 = sphi %s4642_s12, %s37_s12   ;;  %s4520_s23 = sphi %s4640_s23, %s5595_s23   ;;  %s4516_s2 = sphi %s4638_s2, %s5594_s2   ;;  %s4512_s22 = sphi %s4636_s22, %s5593_s22   ;;  %s4508_s21 = sphi %s4634_s21, %s5592_s21   ;;  %s4504_s20 = sphi %s4632_s20, %s5591_s20   ;;  %s4500_s1 = sphi %s4630_s1, %s5590_s1   ;;  %s4496_s19 = sphi %s4628_s19, %s5589_s19  }
  0x28   : > { %5540 = sst [smem:[#allocation9_spill]] %s4500_s1  ;;  %s3477_s25 = sadd.s32 4294967294, %s4524_s12  }
  0x29   : > { %5541 = sst [smem:[#allocation10_spill]] %s4504_s20  ;;  %s46_s26 = sadd.s32 1, %s4516_s2 }
  0x2a   : > { %5542 = sst [smem:[#allocation11_spill]] %s4508_s21  ;;  %p47_p5 = scmp.ge.s32.totalorder %s46_s26, 2 }
  0x2b   : > { %5543 = sst [smem:[#allocation12_spill]] %s4512_s22  ;;  %s49_s27 = sadd.s32 1, %s4520_s23 }
  0x2c   : > { %5544 = sst [smem:[#allocation13_spill]] %s4516_s2  ;;  %p508_p6 = scmp.ne.s32.totalorder %s4504_s20, %s4500_s1 }
  0x2d   : > { %5545 = sst [smem:[#allocation14_spill]] %s4520_s23  ;;  %p509_p7 = scmp.eq.s32.totalorder %s3476_s24, 3 }
  0x2e   : > { %5546 = sst [smem:[#allocation15_spill]] %s4524_s12  ;;  %s5597_s26 = smov (%p47_p5, %s46_s26), 0 }
  0x2f   : > { %5547 = sst [smem:[#allocation16_spill]] %s5597_s26  ;;  %s5599_s27 = smov (!%p47_p5, %s49_s27), %s4520_s23 }
  0x30   : > { %p4677_p8 = por %p509_p7, %p508_p6  ;;  %p514_p9 = scmp.ne.s32.totalorder %s4500_s1, %s4496_s19 }
  0x31   : > { %p51_p10 = scmp.ge.s32.totalorder %s5599_s27, 2  ;;  %p515_p11 = scmp.eq.s32.totalorder %s3477_s25, 3 }
  0x32   : > { %s5548_s28 = scalar_select %p4677_p8, 1, 0 }
  0x33   : > { %p3480_p12 = scmp.ge.s32.totalorder %s4524_s12, 1  ;;  %p652_p13 = scmp.lt.s32.totalorder %s4524_s12, 5 }
  0x34   : > { %5549 = sst [smem:[#allocation17_spill]] %s5548_s28  ;;  %s5601_s27 = smov (%p51_p10, %s5599_s27), 0 }
  0x35   : > { %5550 = sst [smem:[#allocation18_spill]] %s5601_s27  ;;  %p4687_p0 = por %p515_p11, %p514_p9 }
  0x36   : > { %p653_p1 = pnand %p3480_p12, %p652_p13  ;;  %s495_s30 = ssub.s32 %s4520_s23, %s5601_s27 }
  0x37   : > { %s5551_s29 = scalar_select %p4687_p0, 1, 0 }
  0x38   : > { %s498_s0 = sadd.s32 1, %s4504_s20  ;;  %p496_p2 = scmp.eq.s32.totalorder %s495_s30, 0 }
  0x39   : > { %5552 = sst [smem:[#allocation19_spill]] %s5551_s29  ;;  %656 = sbr.rel (%p653_p1) target bundleno = 2361 (0x939), region = 88 }
  0x3a   : > { %s4695_s24 = scalar_select %p496_p2, %s4504_s20, %s498_s0  }
  0x3c   : > { %5553 = sst [smem:[#allocation20_spill]] %s4695_s24 }
  0x3e   : > { %s5511_s25 = sand.u32 1, %s4500_s1   ;;  %p767_p3 = scmp.lt.s32.totalorder %s4512_s22, 1 }
  0x3f   : > { %s3481_s26 = sshll.u32 %s5511_s25, 3  ;;  %p771_p4 = scmp.lt.s32.totalorder %s4508_s21, 1 }
  0x40   : > { %s768_s2 = scalar_select %p767_p3, %s4512_s22, 1 }
  0x41   : > { %s4704_s29 = scalar_select %p771_p4, %s4508_s21, 1 }
  0x42   : > { %s3482_s30 = sshll.u32 %s768_s2, 3  ;;  %s5554_s23 = sld [smem:[#allocation26_spill]] }
  0x43   : > { %s3538_s20 = sshll.u32 %s4704_s29, 9  ;;  %s5555_s12 = sld [smem:[#allocation27_spill]] }
  0x44   : > { %s3485_s28 = sshll.u32 %s4704_s29, 2  ;;  %s5556_s3 = sld [smem:[#allocation28_spill]] }
  0x45   : > { %s5558_s4 = sld [smem:[#allocation29_spill]]  ;;  %s3541_s17 = sshll.u32 %s4704_s29, 7 }
  0x46   : > { %s5560_s5 = sld [smem:[#allocation30_spill]]  ;;  %s3496_s22 = sshll.u32 %s4704_s29, 1 }
  0x47   : > { %s5562_s6 = sld [smem:[#allocation31_spill]]  ;;  %s828_s25 = scalar_lea.vmem %s5501_s15, %s4704_s29 }
  0x48   : > { %s770_s24 = scalar_lea.vmem %s5554_s23, %s3482_s30  ;;  %s5563_s7 = sld [smem:[#allocation32_spill]] }
  0x49   : > { %s4713_s18 = scalar_lea.vmem %s5555_s12, %s3538_s20  ;;  %s5565_s8 = sld [smem:[#allocation33_spill]] }
  0x4a   : > { %s4719_s21 = scalar_lea.vmem %s5556_s3, %s3485_s28  ;;  %s4769_s23 = scalar_lea.vmem %s5499_s13, %s3496_s22 }
  0x4b   : > { %5557 = sst [smem:[#allocation21_spill]] %s4719_s21  ;;  %s4724_s27 = scalar_lea.vmem %s5558_s4, %s3538_s20 }
  0x4c   : > { %5559 = sst [smem:[#allocation22_spill]] %s4724_s27  ;;  %s4729_s19 = scalar_lea.vmem %s5560_s5, %s3485_s28 }
  0x4d   : > { %5561 = sst [smem:[#allocation23_spill]] %s4729_s19  ;;  %s4734_s0 = scalar_lea.vmem %s5562_s6, %s3538_s20 }
  0x4e   : > { %s4739_s3 = scalar_lea.vmem %s5563_s7, %s3485_s28  ;;  %s3542_s28 = sshll.u32 %s4704_s29, 8 }
  0x4f   : > { %5564 = sst [smem:[#allocation24_spill]] %s4739_s3  ;;  %s4745_s21 = scalar_lea.vmem %s5565_s8, %s3541_s17 }
  0x50   : > { %s5567_s3 = sld [smem:[#allocation35_spill]]  ;;  %s4774_s27 = scalar_lea.vmem %s5500_s14, %s3542_s28 }
  0x51   : > { %s831_s6 = scalar_lea.vmem %s5502_s16, %s4704_s29  ;;  %s5568_s8 = sld [smem:[#allocation36_spill]] }
  0x52   : > { %s4788_s17 = scalar_lea.vmem [#allocation4], %s3481_s26  ;;  %s5569_s22 = sld [smem:[#allocation11_spill]] }
  0x56   : > { %s4764_s4 = scalar_lea.vmem %s5567_s3, %s3542_s28 }
  0x57   : > { %s834_s11 = scalar_lea.vmem %s5568_s8, %s4704_s29 }
  0x58   : > { %p3499_p5 = scmp.ne.s32.totalorder %s5569_s22, 0 }
  0x5a   : > { %838 = sbr.rel (%p3499_p5) target bundleno = 97 (0x61), region = 92 }
  0x5f   : > { %v839_v0 = vld [vmem:[%s770_s24] sm:$0xff] }
  0x60   : > { %840 = vst [vmem:[%s4788_s17] sm:$0xff] %v839_v0 }
  0x61 PF: > { %v862_v1 = vld [vmem:[%s4713_s18 + $0x78] sm:$0xff]  ;;  %v4527_v3 = vmov 0.0   ;;  %v861_v4 = vld [vmem:[%s4713_s18 + $0x70] sm:$0xff]  ;;  %v860_v6 = vld [vmem:[%s4713_s18 + $0x68] sm:$0xff]  ;;  %vm4528_vm0 = vmmov 0   ;;  %s5570_s5 = sld [smem:[#allocation22_spill]]  ;;  %s5577_s1 = scalar_lea.vmem %s5495_s9, %s4704_s29 }
  0x62   : > { %v878_v2 = vld [vmem:[%s4713_s18 + $0xf8] sm:$0xff]  ;;  %3819 = vmatprep.subr.mxu0 %v4527_v3  ;;  %3854 = vmatprep.subr.mxu1 %v4527_v3  ;;  %v877_v5 = vld [vmem:[%s4713_s18 + $0xf0] sm:$0xff]  ;;  %v876_v7 = vld [vmem:[%s4713_s18 + $0xe8] sm:$0xff]  ;;  %s5571_s8 = sld [smem:[#allocation23_spill]]  ;;  %vm1963_vm1 = vcmask 261120   ;;  %vm2278_vm3 = vcmask 64512   ;;  %s5578_s2 = scalar_lea.vmem %s5496_s10, %s4704_s29 }
  0x63   : > { %3820 = vmatpush3.msra.mxu0 %v862_v1  ;;  %3855 = vmatpush3.msra.mxu1 %v878_v2  ;;  %v859_v8 = vld [vmem:[%s4713_s18 + $0x60] sm:$0xff]  ;;  %v858_v10 = vld [vmem:[%s4713_s18 + $0x58] sm:$0xff]  ;;  %v857_v12 = vld [vmem:[%s4713_s18 + $0x50] sm:$0xff]  ;;  %s5573_s26 = sld [smem:[#allocation24_spill]] }
  0x64   : > { %3821 = vmatprep.subr.mxu0 %v4527_v3  ;;  %3856 = vmatprep.subr.mxu1 %v4527_v3  ;;  %v875_v9 = vld [vmem:[%s4713_s18 + $0xe0] sm:$0xff]  ;;  %v874_v11 = vld [vmem:[%s4713_s18 + $0xd8] sm:$0xff]  ;;  %v873_v13 = vld [vmem:[%s4713_s18 + $0xd0] sm:$0xff]  ;;  %s5574_s24 = sld [smem:[#allocation12_spill]] }
  0x65   : > { %3822 = vmatpush3.msra.mxu0 %v861_v4  ;;  %3857 = vmatpush3.msra.mxu1 %v877_v5  ;;  %v856_v14 = vld [vmem:[%s4713_s18 + $0x48] sm:$0xff]  ;;  %v855_v16 = vld [vmem:[%s4713_s18 + $0x40] sm:$0xff]  ;;  %v854_v18 = vld [vmem:[%s4713_s18 + $0x38] sm:$0xff]  ;;  %s5579_s12 = sld [smem:[#allocation34_spill]] }
  0x66   : > { %3823 = vmatprep.subr.mxu0 %v4527_v3  ;;  %3858 = vmatprep.subr.mxu1 %v4527_v3  ;;  %v872_v15 = vld [vmem:[%s4713_s18 + $0xc8] sm:$0xff]  ;;  %v871_v17 = vld [vmem:[%s4713_s18 + $0xc0] sm:$0xff]  ;;  %v870_v19 = vld [vmem:[%s4713_s18 + $0xb8] sm:$0xff]  ;;  %s5584_s28 = sld [smem:[#allocation37_spill]] }
  0x67   : > { %3824 = vmatpush3.msra.mxu0 %v860_v6  ;;  %3859 = vmatpush3.msra.mxu1 %v876_v7  ;;  %v853_v20 = vld [vmem:[%s4713_s18 + $0x30] sm:$0xff]  ;;  %v852_v22 = vld [vmem:[%s4713_s18 + $0x28] sm:$0xff]  ;;  %v851_v24 = vld [vmem:[%s4713_s18 + $0x20] sm:$0xff] }
  0x68   : > { %3825 = vmatprep.subr.mxu0 %v4527_v3  ;;  %3860 = vmatprep.subr.mxu1 %v4527_v3  ;;  %v869_v21 = vld [vmem:[%s4713_s18 + $0xb0] sm:$0xff]  ;;  %v868_v23 = vld [vmem:[%s4713_s18 + $0xa8] sm:$0xff]  ;;  %v867_v25 = vld [vmem:[%s4713_s18 + $0xa0] sm:$0xff] }
  0x69   : > { %3826 = vmatpush3.msra.mxu0 %v859_v8  ;;  %3861 = vmatpush3.msra.mxu1 %v875_v9  ;;  %v850_v26 = vld [vmem:[%s4713_s18 + $0x18] sm:$0xff]  ;;  %v849_v28 = vld [vmem:[%s4713_s18 + $0x10] sm:$0xff]  ;;  %v848_v30 = vld [vmem:[%s4713_s18 + $0x8] sm:$0xff] }
  0x6a   : > { %3827 = vmatprep.subr.mxu0 %v4527_v3  ;;  %3862 = vmatprep.subr.mxu1 %v4527_v3  ;;  %v866_v27 = vld [vmem:[%s4713_s18 + $0x98] sm:$0xff]  ;;  %v865_v29 = vld [vmem:[%s4713_s18 + $0x90] sm:$0xff]  ;;  %v864_v31 = vld [vmem:[%s4713_s18 + $0x88] sm:$0xff] }
  0x6b   : > { %3828 = vmatpush3.msra.mxu0 %v858_v10  ;;  %3863 = vmatpush3.msra.mxu1 %v874_v11  ;;  %v847_v32 = vld [vmem:[%s4713_s18] sm:$0xff]  ;;  %v894_v35 = vld [vmem:[%s4713_s18 + $0x178] sm:$0xff]  ;;  %v893_v37 = vld [vmem:[%s4713_s18 + $0x170] sm:$0xff]  ;;  %s5580_s3 = scalar_lea.vmem %s5579_s12, %s4704_s29 }
  0x6c   : > { %3829 = vmatprep.subr.mxu0 %v4527_v3  ;;  %3864 = vmatprep.subr.mxu1 %v4527_v3  ;;  %v863_v33 = vld [vmem:[%s4713_s18 + $0x80] sm:$0xff]  ;;  %v910_v36 = vld [vmem:[%s4713_s18 + $0x1f8] sm:$0xff]  ;;  %v909_v38 = vld [vmem:[%s4713_s18 + $0x1f0] sm:$0xff] }
  0x6d   : > { %3830 = vmatpush3.msra.mxu0 %v857_v12  ;;  %3865 = vmatpush3.msra.mxu1 %v873_v13  ;;  %v4855_v34 = vld [vmem:[%s4788_s17] sm:$0xff]  ;;  %v890_v43 = vld [vmem:[%s4713_s18 + $0x158] sm:$0xff]  ;;  %v889_v45 = vld [vmem:[%s4713_s18 + $0x150] sm:$0xff] }
  0x6e   : > { %3831 = vmatprep.subr.mxu0 %v4527_v3  ;;  %3866 = vmatprep.subr.mxu1 %v4527_v3  ;;  %v892_v39 = vld [vmem:[%s4713_s18 + $0x168] sm:$0xff]  ;;  %v891_v41 = vld [vmem:[%s4713_s18 + $0x160] sm:$0xff]  ;;  %v906_v44 = vld [vmem:[%s4713_s18 + $0x1d8] sm:$0xff] }
  0x6f   : > { %3832 = vmatpush3.msra.mxu0 %v856_v14  ;;  %3867 = vmatpush3.msra.mxu1 %v872_v15  ;;  %v908_v40 = vld [vmem:[%s4713_s18 + $0x1e8] sm:$0xff]  ;;  %v907_v42 = vld [vmem:[%s4713_s18 + $0x1e0] sm:$0xff]  ;;  %v905_v46 = vld [vmem:[%s4713_s18 + $0x1d0] sm:$0xff] }
  0x70   : > { %3833 = vmatprep.subr.mxu0 %v4527_v3  ;;  %3868 = vmatprep.subr.mxu1 %v4527_v3  ;;  %v888_v47 = vld [vmem:[%s4713_s18 + $0x148] sm:$0xff]  ;;  %v887_v49 = vld [vmem:[%s4713_s18 + $0x140] sm:$0xff]  ;;  %v886_v51 = vld [vmem:[%s4713_s18 + $0x138] sm:$0xff] }
  0x71   : > { %3834 = vmatpush3.msra.mxu0 %v855_v16  ;;  %3869 = vmatpush3.msra.mxu1 %v871_v17  ;;  %v904_v48 = vld [vmem:[%s4713_s18 + $0x1c8] sm:$0xff]  ;;  %v903_v50 = vld [vmem:[%s4713_s18 + $0x1c0] sm:$0xff]  ;;  %v902_v52 = vld [vmem:[%s4713_s18 + $0x1b8] sm:$0xff] }
  0x72   : > { %3835 = vmatprep.subr.mxu0 %v4527_v3  ;;  %3870 = vmatprep.subr.mxu1 %v4527_v3  ;;  %v885_v53 = vld [vmem:[%s4713_s18 + $0x130] sm:$0xff]  ;;  %v884_v55 = vld [vmem:[%s4713_s18 + $0x128] sm:$0xff]  ;;  %v883_v57 = vld [vmem:[%s4713_s18 + $0x120] sm:$0xff] }
  0x73   : > { %3836 = vmatpush3.msra.mxu0 %v854_v18  ;;  %3871 = vmatpush3.msra.mxu1 %v870_v19  ;;  %v901_v54 = vld [vmem:[%s4713_s18 + $0x1b0] sm:$0xff]  ;;  %v900_v56 = vld [vmem:[%s4713_s18 + $0x1a8] sm:$0xff]  ;;  %v899_v58 = vld [vmem:[%s4713_s18 + $0x1a0] sm:$0xff] }
  0x74   : > { %3837 = vmatprep.subr.mxu0 %v4527_v3  ;;  %3872 = vmatprep.subr.mxu1 %v4527_v3  ;;  %v882_v59 = vld [vmem:[%s4713_s18 + $0x118] sm:$0xff]  ;;  %v881_v61 = vld [vmem:[%s4713_s18 + $0x110] sm:$0xff]  ;;  %v880_v63 = vld [vmem:[%s4713_s18 + $0x108] sm:$0xff] }
  0x75   : > { %3838 = vmatpush3.msra.mxu0 %v853_v20  ;;  %3873 = vmatpush3.msra.mxu1 %v869_v21  ;;  %v898_v60 = vld [vmem:[%s4713_s18 + $0x198] sm:$0xff]  ;;  %v897_v62 = vld [vmem:[%s4713_s18 + $0x190] sm:$0xff]  ;;  %v896_v0 = vld [vmem:[%s4713_s18 + $0x188] sm:$0xff] }
  0x76   : > { %3839 = vmatprep.subr.mxu0 %v4527_v3  ;;  %3874 = vmatprep.subr.mxu1 %v4527_v3  ;;  %v879_v1 = vld [vmem:[%s4713_s18 + $0x100] sm:$0xff]  ;;  %v1234_v4 = vld [vmem:[%s5570_s5 + $0x78] sm:$0xff]  ;;  %v1233_v6 = vld [vmem:[%s5570_s5 + $0x70] sm:$0xff] }
  0x77   : > { %3840 = vmatpush3.msra.mxu0 %v852_v22  ;;  %3875 = vmatpush3.msra.mxu1 %v868_v23  ;;  %v895_v2 = vld [vmem:[%s4713_s18 + $0x180] sm:$0xff]  ;;  %v1250_v5 = vld [vmem:[%s5570_s5 + $0xf8] sm:$0xff]  ;;  %v1249_v7 = vld [vmem:[%s5570_s5 + $0xf0] sm:$0xff]  ;;  %s5572_s18 = sld [smem:[#allocation21_spill]] }
  0x78   : > { %3841 = vmatprep.subr.mxu0 %v4527_v3  ;;  %3876 = vmatprep.subr.mxu1 %v4527_v3  ;;  %v1232_v8 = vld [vmem:[%s5570_s5 + $0x68] sm:$0xff]  ;;  %v1231_v10 = vld [vmem:[%s5570_s5 + $0x60] sm:$0xff]  ;;  %v1230_v12 = vld [vmem:[%s5570_s5 + $0x58] sm:$0xff] }
  0x79   : > { %3842 = vmatpush3.msra.mxu0 %v851_v24  ;;  %3877 = vmatpush3.msra.mxu1 %v867_v25  ;;  %v1248_v9 = vld [vmem:[%s5570_s5 + $0xe8] sm:$0xff]  ;;  %v1247_v11 = vld [vmem:[%s5570_s5 + $0xe0] sm:$0xff]  ;;  %v1246_v13 = vld [vmem:[%s5570_s5 + $0xd8] sm:$0xff] }
  0x7a   : > { %3843 = vmatprep.subr.mxu0 %v4527_v3  ;;  %3878 = vmatprep.subr.mxu1 %v4527_v3  ;;  %v1229_v14 = vld [vmem:[%s5570_s5 + $0x50] sm:$0xff]  ;;  %v1228_v16 = vld [vmem:[%s5570_s5 + $0x48] sm:$0xff]  ;;  %v1227_v18 = vld [vmem:[%s5570_s5 + $0x40] sm:$0xff] }
  0x7b   : > { %3844 = vmatpush3.msra.mxu0 %v850_v26  ;;  %3879 = vmatpush3.msra.mxu1 %v866_v27  ;;  %v1245_v15 = vld [vmem:[%s5570_s5 + $0xd0] sm:$0xff]  ;;  %v1244_v17 = vld [vmem:[%s5570_s5 + $0xc8] sm:$0xff]  ;;  %v1243_v19 = vld [vmem:[%s5570_s5 + $0xc0] sm:$0xff] }
  0x7c   : > { %3845 = vmatprep.subr.mxu0 %v4527_v3  ;;  %3880 = vmatprep.subr.mxu1 %v4527_v3  ;;  %v1226_v20 = vld [vmem:[%s5570_s5 + $0x38] sm:$0xff]  ;;  %v1225_v22 = vld [vmem:[%s5570_s5 + $0x30] sm:$0xff]  ;;  %v1224_v24 = vld [vmem:[%s5570_s5 + $0x28] sm:$0xff] }
  0x7d   : > { %3846 = vmatpush3.msra.mxu0 %v849_v28  ;;  %3881 = vmatpush3.msra.mxu1 %v865_v29  ;;  %v1242_v21 = vld [vmem:[%s5570_s5 + $0xb8] sm:$0xff]  ;;  %v1241_v23 = vld [vmem:[%s5570_s5 + $0xb0] sm:$0xff]  ;;  %v1240_v25 = vld [vmem:[%s5570_s5 + $0xa8] sm:$0xff] }
  0x7e   : > { %3847 = vmatprep.subr.mxu0 %v4527_v3  ;;  %3882 = vmatprep.subr.mxu1 %v4527_v3  ;;  %v1223_v26 = vld [vmem:[%s5570_s5 + $0x20] sm:$0xff]  ;;  %v1222_v28 = vld [vmem:[%s5570_s5 + $0x18] sm:$0xff] }
  0x7f   : > { %3848 = vmatpush3.msra.mxu0 %v848_v30  ;;  %3883 = vmatpush3.msra.mxu1 %v864_v31  ;;  %v1239_v27 = vld [vmem:[%s5570_s5 + $0xa0] sm:$0xff]  ;;  %v1238_v29 = vld [vmem:[%s5570_s5 + $0x98] sm:$0xff]  ;;  %v1221_v30 = vld [vmem:[%s5570_s5 + $0x10] sm:$0xff] }
  0x80   : > { %3849 = vmatprep.subr.mxu0 %v4527_v3  ;;  %3884 = vmatprep.subr.mxu1 %v4527_v3  ;;  %v1237_v31 = vld [vmem:[%s5570_s5 + $0x90] sm:$0xff] }
  0x81   : > { %3850 = vmatpush3.msra.mxu0 %v847_v32  ;;  %3851 = vmatprep.mubr.msk.f32.mxu0 %vm4528_vm0, %v4527_v3  ;;  %v1220_v32 = vld [vmem:[%s5570_s5 + $0x8] sm:$0xff] }
  0x82   : > { %3885 = vmatpush3.msra.mxu1 %v863_v33  ;;  %3852 = vmatmul.mubr.f32.vlgmr.msra.gmra.mxu0 %v4855_v34  ;;  %v1236_v33 = vld [vmem:[%s5570_s5 + $0x88] sm:$0xff] }
  0x83   : > { %3886 = vmatprep.mubr.msk.f32.mxu1 %vm4528_vm0, %v4527_v3  ;;  %3889 = vmatprep.subr.mxu0 %v4527_v3 }
  0x84   : > { %3924 = vmatprep.subr.mxu1 %v4527_v3  ;;  %3887 = vmatmul.mubr.f32.vlgmr.msra.gmra.mxu1 %v4855_v34 }
  0x85   : > { %3890 = vmatpush3.msra.mxu0 %v894_v35  ;;  %3925 = vmatpush3.msra.mxu1 %v910_v36  ;;  %v1219_v35 = vld [vmem:[%s5570_s5] sm:$0xff] }
  0x86   : > { %3891 = vmatprep.subr.mxu0 %v4527_v3  ;;  %3926 = vmatprep.subr.mxu1 %v4527_v3  ;;  %v1235_v36 = vld [vmem:[%s5570_s5 + $0x80] sm:$0xff] }
  0x87   : > { %3892 = vmatpush3.msra.mxu0 %v893_v37  ;;  %3927 = vmatpush3.msra.mxu1 %v909_v38  ;;  %v1266_v37 = vld [vmem:[%s5570_s5 + $0x178] sm:$0xff] }
  0x88   : > { %3893 = vmatprep.subr.mxu0 %v4527_v3  ;;  %3928 = vmatprep.subr.mxu1 %v4527_v3  ;;  %v1282_v38 = vld [vmem:[%s5570_s5 + $0x1f8] sm:$0xff] }
  0x89   : > { %3894 = vmatpush3.msra.mxu0 %v892_v39  ;;  %3929 = vmatpush3.msra.mxu1 %v908_v40  ;;  %v1265_v39 = vld [vmem:[%s5570_s5 + $0x170] sm:$0xff] }
  0x8a   : > { %3895 = vmatprep.subr.mxu0 %v4527_v3  ;;  %3930 = vmatprep.subr.mxu1 %v4527_v3  ;;  %v1281_v40 = vld [vmem:[%s5570_s5 + $0x1f0] sm:$0xff] }
  0x8b   : > { %3896 = vmatpush3.msra.mxu0 %v891_v41  ;;  %3931 = vmatpush3.msra.mxu1 %v907_v42  ;;  %v1264_v41 = vld [vmem:[%s5570_s5 + $0x168] sm:$0xff] }
  0x8c   : > { %3897 = vmatprep.subr.mxu0 %v4527_v3  ;;  %3932 = vmatprep.subr.mxu1 %v4527_v3  ;;  %v1280_v42 = vld [vmem:[%s5570_s5 + $0x1e8] sm:$0xff] }
  0x8d   : > { %3898 = vmatpush3.msra.mxu0 %v890_v43  ;;  %3933 = vmatpush3.msra.mxu1 %v906_v44  ;;  %v1263_v43 = vld [vmem:[%s5570_s5 + $0x160] sm:$0xff] }
  0x8e   : > { %3899 = vmatprep.subr.mxu0 %v4527_v3  ;;  %3934 = vmatprep.subr.mxu1 %v4527_v3  ;;  %v1279_v44 = vld [vmem:[%s5570_s5 + $0x1e0] sm:$0xff] }
  0x8f   : > { %3900 = vmatpush3.msra.mxu0 %v889_v45  ;;  %3935 = vmatpush3.msra.mxu1 %v905_v46  ;;  %v1262_v45 = vld [vmem:[%s5570_s5 + $0x158] sm:$0xff] }
  0x90   : > { %3901 = vmatprep.subr.mxu0 %v4527_v3  ;;  %3936 = vmatprep.subr.mxu1 %v4527_v3  ;;  %v1278_v46 = vld [vmem:[%s5570_s5 + $0x1d8] sm:$0xff] }
  0x91   : > { %3902 = vmatpush3.msra.mxu0 %v888_v47  ;;  %3937 = vmatpush3.msra.mxu1 %v904_v48  ;;  %v1261_v47 = vld [vmem:[%s5570_s5 + $0x150] sm:$0xff] }
  0x92   : > { %3903 = vmatprep.subr.mxu0 %v4527_v3  ;;  %3938 = vmatprep.subr.mxu1 %v4527_v3  ;;  %v1277_v48 = vld [vmem:[%s5570_s5 + $0x1d0] sm:$0xff] }
  0x93   : > { %3904 = vmatpush3.msra.mxu0 %v887_v49  ;;  %3939 = vmatpush3.msra.mxu1 %v903_v50  ;;  %v1260_v49 = vld [vmem:[%s5570_s5 + $0x148] sm:$0xff] }
  0x94   : > { %3905 = vmatprep.subr.mxu0 %v4527_v3  ;;  %3940 = vmatprep.subr.mxu1 %v4527_v3  ;;  %v1276_v50 = vld [vmem:[%s5570_s5 + $0x1c8] sm:$0xff] }
  0x95   : > { %3906 = vmatpush3.msra.mxu0 %v886_v51  ;;  %3941 = vmatpush3.msra.mxu1 %v902_v52  ;;  %v1259_v51 = vld [vmem:[%s5570_s5 + $0x140] sm:$0xff] }
  0x96   : > { %3907 = vmatprep.subr.mxu0 %v4527_v3  ;;  %3942 = vmatprep.subr.mxu1 %v4527_v3  ;;  %v1275_v52 = vld [vmem:[%s5570_s5 + $0x1c0] sm:$0xff] }
  0x97   : > { %3908 = vmatpush3.msra.mxu0 %v885_v53  ;;  %3943 = vmatpush3.msra.mxu1 %v901_v54  ;;  %v1258_v53 = vld [vmem:[%s5570_s5 + $0x138] sm:$0xff] }
  0x98   : > { %3909 = vmatprep.subr.mxu0 %v4527_v3  ;;  %3944 = vmatprep.subr.mxu1 %v4527_v3  ;;  %v1274_v54 = vld [vmem:[%s5570_s5 + $0x1b8] sm:$0xff] }
  0x99   : > { %3910 = vmatpush3.msra.mxu0 %v884_v55  ;;  %3945 = vmatpush3.msra.mxu1 %v900_v56  ;;  %v1257_v55 = vld [vmem:[%s5570_s5 + $0x130] sm:$0xff] }
  0x9a   : > { %3911 = vmatprep.subr.mxu0 %v4527_v3  ;;  %3946 = vmatprep.subr.mxu1 %v4527_v3  ;;  %v1273_v56 = vld [vmem:[%s5570_s5 + $0x1b0] sm:$0xff] }
  0x9b   : > { %3912 = vmatpush3.msra.mxu0 %v883_v57  ;;  %3947 = vmatpush3.msra.mxu1 %v899_v58  ;;  %v1256_v57 = vld [vmem:[%s5570_s5 + $0x128] sm:$0xff] }
  0x9c   : > { %3913 = vmatprep.subr.mxu0 %v4527_v3  ;;  %3948 = vmatprep.subr.mxu1 %v4527_v3  ;;  %v1272_v58 = vld [vmem:[%s5570_s5 + $0x1a8] sm:$0xff] }
  0x9d   : > { %3914 = vmatpush3.msra.mxu0 %v882_v59  ;;  %3949 = vmatpush3.msra.mxu1 %v898_v60  ;;  %v1255_v59 = vld [vmem:[%s5570_s5 + $0x120] sm:$0xff] }
  0x9e   : > { %3915 = vmatprep.subr.mxu0 %v4527_v3  ;;  %3950 = vmatprep.subr.mxu1 %v4527_v3  ;;  %v1271_v60 = vld [vmem:[%s5570_s5 + $0x1a0] sm:$0xff] }
  0x9f   : > { %3916 = vmatpush3.msra.mxu0 %v881_v61  ;;  %3951 = vmatpush3.msra.mxu1 %v897_v62  ;;  %v1254_v61 = vld [vmem:[%s5570_s5 + $0x118] sm:$0xff] }
  0xa0   : > { %3917 = vmatprep.subr.mxu0 %v4527_v3  ;;  %3952 = vmatprep.subr.mxu1 %v4527_v3  ;;  %v1270_v62 = vld [vmem:[%s5570_s5 + $0x198] sm:$0xff] }
  0xa1   : > { %3918 = vmatpush3.msra.mxu0 %v880_v63  ;;  %3953 = vmatpush3.msra.mxu1 %v896_v0  ;;  %v1253_v63 = vld [vmem:[%s5570_s5 + $0x110] sm:$0xff] }
  0xa2   : > { %3919 = vmatprep.subr.mxu0 %v4527_v3  ;;  %3954 = vmatprep.subr.mxu1 %v4527_v3  ;;  %v1269_v0 = vld [vmem:[%s5570_s5 + $0x190] sm:$0xff] }
  0xa3   : > { %3920 = vmatpush3.msra.mxu0 %v879_v1  ;;  %3921 = vmatprep.mubr.msk.f32.mxu0 %vm4528_vm0, %v4527_v3  ;;  %v1252_v1 = vld [vmem:[%s5570_s5 + $0x108] sm:$0xff] }
  0xa4   : > { %3955 = vmatpush3.msra.mxu1 %v895_v2  ;;  %3922 = vmatmul.mubr.f32.vlgmr.msra.gmra.mxu0 %v4855_v34  ;;  %v1268_v2 = vld [vmem:[%s5570_s5 + $0x188] sm:$0xff] }
  0xa5   : > { %3956 = vmatprep.mubr.msk.f32.mxu1 %vm4528_vm0, %v4527_v3  ;;  %3959 = vmatprep.subr.mxu0 %v4527_v3 }
  0xa6   : > { %3994 = vmatprep.subr.mxu1 %v4527_v3  ;;  %3957 = vmatmul.mubr.f32.vlgmr.msra.gmra.mxu1 %v4855_v34 }
  0xa7   : > { %3960 = vmatpush3.msra.mxu0 %v1234_v4  ;;  %3995 = vmatpush3.msra.mxu1 %v1250_v5  ;;  %v1251_v4 = vld [vmem:[%s5570_s5 + $0x100] sm:$0xff] }
  0xa8   : > { %3961 = vmatprep.subr.mxu0 %v4527_v3  ;;  %3996 = vmatprep.subr.mxu1 %v4527_v3  ;;  %v1267_v5 = vld [vmem:[%s5570_s5 + $0x180] sm:$0xff] }
  0xa9   : > { %3962 = vmatpush3.msra.mxu0 %v1233_v6  ;;  %3997 = vmatpush3.msra.mxu1 %v1249_v7  ;;  %v1606_v6 = vld [vmem:[%s4734_s0 + $0x78] sm:$0xff] }
  0xaa   : > { %3963 = vmatprep.subr.mxu0 %v4527_v3  ;;  %3998 = vmatprep.subr.mxu1 %v4527_v3  ;;  %v1622_v7 = vld [vmem:[%s4734_s0 + $0xf8] sm:$0xff] }
  0xab   : > { %3964 = vmatpush3.msra.mxu0 %v1232_v8  ;;  %3999 = vmatpush3.msra.mxu1 %v1248_v9  ;;  %v1605_v8 = vld [vmem:[%s4734_s0 + $0x70] sm:$0xff] }
  0xac   : > { %3965 = vmatprep.subr.mxu0 %v4527_v3  ;;  %4000 = vmatprep.subr.mxu1 %v4527_v3  ;;  %v1621_v9 = vld [vmem:[%s4734_s0 + $0xf0] sm:$0xff] }
  0xad   : > { %3966 = vmatpush3.msra.mxu0 %v1231_v10  ;;  %4001 = vmatpush3.msra.mxu1 %v1247_v11  ;;  %v1604_v10 = vld [vmem:[%s4734_s0 + $0x68] sm:$0xff] }
  0xae   : > { %3967 = vmatprep.subr.mxu0 %v4527_v3  ;;  %4002 = vmatprep.subr.mxu1 %v4527_v3  ;;  %v1620_v11 = vld [vmem:[%s4734_s0 + $0xe8] sm:$0xff] }
  0xaf   : > { %3968 = vmatpush3.msra.mxu0 %v1230_v12  ;;  %4003 = vmatpush3.msra.mxu1 %v1246_v13  ;;  %v1603_v12 = vld [vmem:[%s4734_s0 + $0x60] sm:$0xff] }
  0xb0   : > { %3969 = vmatprep.subr.mxu0 %v4527_v3  ;;  %4004 = vmatprep.subr.mxu1 %v4527_v3  ;;  %v1619_v13 = vld [vmem:[%s4734_s0 + $0xe0] sm:$0xff] }
  0xb1   : > { %3970 = vmatpush3.msra.mxu0 %v1229_v14  ;;  %4005 = vmatpush3.msra.mxu1 %v1245_v15  ;;  %v1602_v14 = vld [vmem:[%s4734_s0 + $0x58] sm:$0xff] }
  0xb2   : > { %3971 = vmatprep.subr.mxu0 %v4527_v3  ;;  %4006 = vmatprep.subr.mxu1 %v4527_v3  ;;  %v1618_v15 = vld [vmem:[%s4734_s0 + $0xd8] sm:$0xff] }
  0xb3   : > { %3972 = vmatpush3.msra.mxu0 %v1228_v16  ;;  %4007 = vmatpush3.msra.mxu1 %v1244_v17  ;;  %v1601_v16 = vld [vmem:[%s4734_s0 + $0x50] sm:$0xff] }
  0xb4   : > { %3973 = vmatprep.subr.mxu0 %v4527_v3  ;;  %4008 = vmatprep.subr.mxu1 %v4527_v3  ;;  %v1617_v17 = vld [vmem:[%s4734_s0 + $0xd0] sm:$0xff] }
  0xb5   : > { %3974 = vmatpush3.msra.mxu0 %v1227_v18  ;;  %4009 = vmatpush3.msra.mxu1 %v1243_v19  ;;  %v1600_v18 = vld [vmem:[%s4734_s0 + $0x48] sm:$0xff] }
  0xb6   : > { %3975 = vmatprep.subr.mxu0 %v4527_v3  ;;  %4010 = vmatprep.subr.mxu1 %v4527_v3  ;;  %v1616_v19 = vld [vmem:[%s4734_s0 + $0xc8] sm:$0xff] }
  0xb7   : > { %3976 = vmatpush3.msra.mxu0 %v1226_v20  ;;  %4011 = vmatpush3.msra.mxu1 %v1242_v21  ;;  %v1599_v20 = vld [vmem:[%s4734_s0 + $0x40] sm:$0xff] }
  0xb8   : > { %3977 = vmatprep.subr.mxu0 %v4527_v3  ;;  %4012 = vmatprep.subr.mxu1 %v4527_v3  ;;  %v1615_v21 = vld [vmem:[%s4734_s0 + $0xc0] sm:$0xff] }
  0xb9   : > { %3978 = vmatpush3.msra.mxu0 %v1225_v22  ;;  %4013 = vmatpush3.msra.mxu1 %v1241_v23  ;;  %v1598_v22 = vld [vmem:[%s4734_s0 + $0x38] sm:$0xff] }
  0xba   : > { %3979 = vmatprep.subr.mxu0 %v4527_v3  ;;  %4014 = vmatprep.subr.mxu1 %v4527_v3  ;;  %v1614_v23 = vld [vmem:[%s4734_s0 + $0xb8] sm:$0xff] }
  0xbb   : > { %3980 = vmatpush3.msra.mxu0 %v1224_v24  ;;  %4015 = vmatpush3.msra.mxu1 %v1240_v25  ;;  %v1597_v24 = vld [vmem:[%s4734_s0 + $0x30] sm:$0xff] }
  0xbc   : > { %3981 = vmatprep.subr.mxu0 %v4527_v3  ;;  %4016 = vmatprep.subr.mxu1 %v4527_v3  ;;  %v1613_v25 = vld [vmem:[%s4734_s0 + $0xb0] sm:$0xff] }
  0xbd   : > { %3982 = vmatpush3.msra.mxu0 %v1223_v26  ;;  %4017 = vmatpush3.msra.mxu1 %v1239_v27  ;;  %v1596_v26 = vld [vmem:[%s4734_s0 + $0x28] sm:$0xff] }
  0xbe   : > { %3983 = vmatprep.subr.mxu0 %v4527_v3  ;;  %4018 = vmatprep.subr.mxu1 %v4527_v3  ;;  %v1612_v27 = vld [vmem:[%s4734_s0 + $0xa8] sm:$0xff] }
  0xbf   : > { %3984 = vmatpush3.msra.mxu0 %v1222_v28  ;;  %4019 = vmatpush3.msra.mxu1 %v1238_v29  ;;  %v1595_v28 = vld [vmem:[%s4734_s0 + $0x20] sm:$0xff] }
  0xc0   : > { %3985 = vmatprep.subr.mxu0 %v4527_v3  ;;  %4020 = vmatprep.subr.mxu1 %v4527_v3  ;;  %v1611_v29 = vld [vmem:[%s4734_s0 + $0xa0] sm:$0xff] }
  0xc1   : > { %3986 = vmatpush3.msra.mxu0 %v1221_v30  ;;  %4021 = vmatpush3.msra.mxu1 %v1237_v31  ;;  %v1594_v30 = vld [vmem:[%s4734_s0 + $0x18] sm:$0xff] }
  0xc2   : > { %3987 = vmatprep.subr.mxu0 %v4527_v3  ;;  %4022 = vmatprep.subr.mxu1 %v4527_v3  ;;  %v1610_v31 = vld [vmem:[%s4734_s0 + $0x98] sm:$0xff] }
  0xc3   : > { %3988 = vmatpush3.msra.mxu0 %v1220_v32  ;;  %4023 = vmatpush3.msra.mxu1 %v1236_v33  ;;  %v1593_v32 = vld [vmem:[%s4734_s0 + $0x10] sm:$0xff] }
  0xc4   : > { %3989 = vmatprep.subr.mxu0 %v4527_v3  ;;  %4024 = vmatprep.subr.mxu1 %v4527_v3  ;;  %v1609_v33 = vld [vmem:[%s4734_s0 + $0x90] sm:$0xff] }
  0xc5   : > { %3990 = vmatpush3.msra.mxu0 %v1219_v35  ;;  %3991 = vmatprep.mubr.msk.f32.mxu0 %vm4528_vm0, %v4527_v3  ;;  %v1592_v35 = vld [vmem:[%s4734_s0 + $0x8] sm:$0xff] }
  0xc6   : > { %4025 = vmatpush3.msra.mxu1 %v1235_v36  ;;  %4026 = vmatprep.mubr.msk.f32.mxu1 %vm4528_vm0, %v4527_v3  ;;  %v1608_v36 = vld [vmem:[%s4734_s0 + $0x88] sm:$0xff] }
  0xc7   : > { %3992 = vmatmul.mubr.f32.vlgmr.msra.gmra.mxu0 %v4855_v34  ;;  %4027 = vmatmul.mubr.f32.vlgmr.msra.gmra.mxu1 %v4855_v34 }
  0xc8   : > { %4029 = vmatprep.subr.mxu0 %v4527_v3  ;;  %4064 = vmatprep.subr.mxu1 %v4527_v3 }
  0xc9   : > { %4030 = vmatpush3.msra.mxu0 %v1266_v37  ;;  %4065 = vmatpush3.msra.mxu1 %v1282_v38  ;;  %v1591_v37 = vld [vmem:[%s4734_s0] sm:$0xff] }
  0xca   : > { %4031 = vmatprep.subr.mxu0 %v4527_v3  ;;  %4066 = vmatprep.subr.mxu1 %v4527_v3  ;;  %v1607_v38 = vld [vmem:[%s4734_s0 + $0x80] sm:$0xff] }
  0xcb   : > { %4032 = vmatpush3.msra.mxu0 %v1265_v39  ;;  %4067 = vmatpush3.msra.mxu1 %v1281_v40  ;;  %v1638_v39 = vld [vmem:[%s4734_s0 + $0x178] sm:$0xff] }
  0xcc   : > { %4033 = vmatprep.subr.mxu0 %v4527_v3  ;;  %4068 = vmatprep.subr.mxu1 %v4527_v3  ;;  %v1654_v40 = vld [vmem:[%s4734_s0 + $0x1f8] sm:$0xff] }
  0xcd   : > { %4034 = vmatpush3.msra.mxu0 %v1264_v41  ;;  %4069 = vmatpush3.msra.mxu1 %v1280_v42  ;;  %v1637_v41 = vld [vmem:[%s4734_s0 + $0x170] sm:$0xff] }
  0xce   : > { %4035 = vmatprep.subr.mxu0 %v4527_v3  ;;  %4070 = vmatprep.subr.mxu1 %v4527_v3  ;;  %v1653_v42 = vld [vmem:[%s4734_s0 + $0x1f0] sm:$0xff] }
  0xcf   : > { %4036 = vmatpush3.msra.mxu0 %v1263_v43  ;;  %4071 = vmatpush3.msra.mxu1 %v1279_v44  ;;  %v1636_v43 = vld [vmem:[%s4734_s0 + $0x168] sm:$0xff] }
  0xd0   : > { %4037 = vmatprep.subr.mxu0 %v4527_v3  ;;  %4072 = vmatprep.subr.mxu1 %v4527_v3  ;;  %v1652_v44 = vld [vmem:[%s4734_s0 + $0x1e8] sm:$0xff] }
  0xd1   : > { %4038 = vmatpush3.msra.mxu0 %v1262_v45  ;;  %4073 = vmatpush3.msra.mxu1 %v1278_v46  ;;  %v1635_v45 = vld [vmem:[%s4734_s0 + $0x160] sm:$0xff] }
  0xd2   : > { %4039 = vmatprep.subr.mxu0 %v4527_v3  ;;  %4074 = vmatprep.subr.mxu1 %v4527_v3  ;;  %v1651_v46 = vld [vmem:[%s4734_s0 + $0x1e0] sm:$0xff] }
  0xd3   : > { %4040 = vmatpush3.msra.mxu0 %v1261_v47  ;;  %4075 = vmatpush3.msra.mxu1 %v1277_v48  ;;  %v1634_v47 = vld [vmem:[%s4734_s0 + $0x158] sm:$0xff] }
  0xd4   : > { %4041 = vmatprep.subr.mxu0 %v4527_v3  ;;  %4076 = vmatprep.subr.mxu1 %v4527_v3  ;;  %v1650_v48 = vld [vmem:[%s4734_s0 + $0x1d8] sm:$0xff] }
  0xd5   : > { %4042 = vmatpush3.msra.mxu0 %v1260_v49  ;;  %4077 = vmatpush3.msra.mxu1 %v1276_v50  ;;  %v1633_v49 = vld [vmem:[%s4734_s0 + $0x150] sm:$0xff] }
  0xd6   : > { %4043 = vmatprep.subr.mxu0 %v4527_v3  ;;  %4078 = vmatprep.subr.mxu1 %v4527_v3  ;;  %v1649_v50 = vld [vmem:[%s4734_s0 + $0x1d0] sm:$0xff] }
  0xd7   : > { %4044 = vmatpush3.msra.mxu0 %v1259_v51  ;;  %4079 = vmatpush3.msra.mxu1 %v1275_v52  ;;  %v1632_v51 = vld [vmem:[%s4734_s0 + $0x148] sm:$0xff] }
  0xd8   : > { %4045 = vmatprep.subr.mxu0 %v4527_v3  ;;  %4080 = vmatprep.subr.mxu1 %v4527_v3  ;;  %v1648_v52 = vld [vmem:[%s4734_s0 + $0x1c8] sm:$0xff] }
  0xd9   : > { %4046 = vmatpush3.msra.mxu0 %v1258_v53  ;;  %4081 = vmatpush3.msra.mxu1 %v1274_v54  ;;  %v1631_v53 = vld [vmem:[%s4734_s0 + $0x140] sm:$0xff] }
  0xda   : > { %4047 = vmatprep.subr.mxu0 %v4527_v3  ;;  %4082 = vmatprep.subr.mxu1 %v4527_v3  ;;  %v1647_v54 = vld [vmem:[%s4734_s0 + $0x1c0] sm:$0xff] }
  0xdb   : > { %4048 = vmatpush3.msra.mxu0 %v1257_v55  ;;  %4083 = vmatpush3.msra.mxu1 %v1273_v56  ;;  %v1630_v55 = vld [vmem:[%s4734_s0 + $0x138] sm:$0xff] }
  0xdc   : > { %4049 = vmatprep.subr.mxu0 %v4527_v3  ;;  %4084 = vmatprep.subr.mxu1 %v4527_v3  ;;  %v1646_v56 = vld [vmem:[%s4734_s0 + $0x1b8] sm:$0xff] }
  0xdd   : > { %4050 = vmatpush3.msra.mxu0 %v1256_v57  ;;  %4085 = vmatpush3.msra.mxu1 %v1272_v58  ;;  %v1629_v57 = vld [vmem:[%s4734_s0 + $0x130] sm:$0xff] }
  0xde   : > { %4051 = vmatprep.subr.mxu0 %v4527_v3  ;;  %4086 = vmatprep.subr.mxu1 %v4527_v3  ;;  %v1645_v58 = vld [vmem:[%s4734_s0 + $0x1b0] sm:$0xff] }
  0xdf   : > { %4052 = vmatpush3.msra.mxu0 %v1255_v59  ;;  %4087 = vmatpush3.msra.mxu1 %v1271_v60  ;;  %v1628_v59 = vld [vmem:[%s4734_s0 + $0x128] sm:$0xff] }
  0xe0   : > { %4053 = vmatprep.subr.mxu0 %v4527_v3  ;;  %4088 = vmatprep.subr.mxu1 %v4527_v3  ;;  %v1644_v60 = vld [vmem:[%s4734_s0 + $0x1a8] sm:$0xff] }
  0xe1   : > { %4054 = vmatpush3.msra.mxu0 %v1254_v61  ;;  %4089 = vmatpush3.msra.mxu1 %v1270_v62  ;;  %v1627_v61 = vld [vmem:[%s4734_s0 + $0x120] sm:$0xff] }
  0xe2   : > { %4055 = vmatprep.subr.mxu0 %v4527_v3  ;;  %4090 = vmatprep.subr.mxu1 %v4527_v3  ;;  %v1643_v62 = vld [vmem:[%s4734_s0 + $0x1a0] sm:$0xff] }
  0xe3   : > { %4056 = vmatpush3.msra.mxu0 %v1253_v63  ;;  %4091 = vmatpush3.msra.mxu1 %v1269_v0  ;;  %v1626_v63 = vld [vmem:[%s4734_s0 + $0x118] sm:$0xff] }
  0xe4   : > { %4057 = vmatprep.subr.mxu0 %v4527_v3  ;;  %4092 = vmatprep.subr.mxu1 %v4527_v3  ;;  %v1642_v0 = vld [vmem:[%s4734_s0 + $0x198] sm:$0xff] }
  0xe5   : > { %4058 = vmatpush3.msra.mxu0 %v1252_v1  ;;  %4093 = vmatpush3.msra.mxu1 %v1268_v2  ;;  %v1625_v1 = vld [vmem:[%s4734_s0 + $0x110] sm:$0xff] }
  0xe6   : > { %4059 = vmatprep.subr.mxu0 %v4527_v3  ;;  %4094 = vmatprep.subr.mxu1 %v4527_v3  ;;  %v1641_v2 = vld [vmem:[%s4734_s0 + $0x190] sm:$0xff] }
  0xe7   : > { %4060 = vmatpush3.msra.mxu0 %v1251_v4  ;;  %4061 = vmatprep.mubr.msk.f32.mxu0 %vm4528_vm0, %v4527_v3  ;;  %v1624_v4 = vld [vmem:[%s4734_s0 + $0x108] sm:$0xff] }
  0xe8   : > { %4095 = vmatpush3.msra.mxu1 %v1267_v5  ;;  %4096 = vmatprep.mubr.msk.f32.mxu1 %vm4528_vm0, %v4527_v3  ;;  %v1640_v5 = vld [vmem:[%s4734_s0 + $0x188] sm:$0xff] }
  0xe9   : > { %4062 = vmatmul.mubr.f32.vlgmr.msra.gmra.mxu0 %v4855_v34  ;;  %4097 = vmatmul.mubr.f32.vlgmr.msra.gmra.mxu1 %v4855_v34 }
  0xea   : > { %4099 = vmatprep.subr.mxu0 %v4527_v3  ;;  %4134 = vmatprep.subr.mxu1 %v4527_v3 }
  0xeb   : > { %4100 = vmatpush3.msra.mxu0 %v1606_v6  ;;  %4135 = vmatpush3.msra.mxu1 %v1622_v7  ;;  %v1623_v6 = vld [vmem:[%s4734_s0 + $0x100] sm:$0xff] }
  0xec   : > { %4101 = vmatprep.subr.mxu0 %v4527_v3  ;;  %4136 = vmatprep.subr.mxu1 %v4527_v3  ;;  %v1639_v7 = vld [vmem:[%s4734_s0 + $0x180] sm:$0xff]  ;;  %s842_s0 = sld [smem:[#allocation3 + %s5574_s24]] }
  0xed   : > { %4102 = vmatpush3.msra.mxu0 %v1605_v8  ;;  %4137 = vmatpush3.msra.mxu1 %v1621_v9 }
  0xee   : > { %4103 = vmatprep.subr.mxu0 %v4527_v3  ;;  %4138 = vmatprep.subr.mxu1 %v4527_v3 }
  0xef   : > { %4104 = vmatpush3.msra.mxu0 %v1604_v10  ;;  %4139 = vmatpush3.msra.mxu1 %v1620_v11 }
  0xf0   : > { %4105 = vmatprep.subr.mxu0 %v4527_v3  ;;  %4140 = vmatprep.subr.mxu1 %v4527_v3 }
  0xf1   : > { %4106 = vmatpush3.msra.mxu0 %v1603_v12  ;;  %4141 = vmatpush3.msra.mxu1 %v1619_v13 }
  0xf2   : > { %4107 = vmatprep.subr.mxu0 %v4527_v3  ;;  %4142 = vmatprep.subr.mxu1 %v4527_v3 }
  0xf3   : > { %4108 = vmatpush3.msra.mxu0 %v1602_v14  ;;  %4143 = vmatpush3.msra.mxu1 %v1618_v15  ;;  %v3504_v15 = vld [vmem:[%s5571_s8] ss:$0 sm:$0xff] }
  0xf4   : > { %4109 = vmatprep.subr.mxu0 %v4527_v3  ;;  %4144 = vmatprep.subr.mxu1 %v4527_v3 }
  0xf5   : > { %4110 = vmatpush3.msra.mxu0 %v1601_v16  ;;  %4145 = vmatpush3.msra.mxu1 %v1617_v17  ;;  %v3505_v16 = vld [vmem:[%s5571_s8 + $0x1] ss:$0 sm:$0xff] }
  0xf6   : > { %4111 = vmatprep.subr.mxu0 %v4527_v3  ;;  %4146 = vmatprep.subr.mxu1 %v4527_v3 }
  0xf7   : > { %4112 = vmatpush3.msra.mxu0 %v1600_v18  ;;  %4147 = vmatpush3.msra.mxu1 %v1616_v19  ;;  %v3500_v19 = vld [vmem:[%s5572_s18] ss:$0 sm:$0xff] }
  0xf8   : > { %4113 = vmatprep.subr.mxu0 %v4527_v3  ;;  %4148 = vmatprep.subr.mxu1 %v4527_v3 }
  0xf9   : > { %4114 = vmatpush3.msra.mxu0 %v1599_v20  ;;  %4149 = vmatpush3.msra.mxu1 %v1615_v21  ;;  %v3501_v20 = vld [vmem:[%s5572_s18 + $0x1] ss:$0 sm:$0xff] }
  0xfa   : > { %4115 = vmatprep.subr.mxu0 %v4527_v3  ;;  %4150 = vmatprep.subr.mxu1 %v4527_v3 }
  0xfb   : > { %4116 = vmatpush3.msra.mxu0 %v1598_v22  ;;  %4151 = vmatpush3.msra.mxu1 %v1614_v23 }
  0xfc   : > { %4117 = vmatprep.subr.mxu0 %v4527_v3  ;;  %4152 = vmatprep.subr.mxu1 %v4527_v3 }
  0xfd   : > { %4118 = vmatpush3.msra.mxu0 %v1597_v24  ;;  %4153 = vmatpush3.msra.mxu1 %v1613_v25 }
  0xfe   : > { %4119 = vmatprep.subr.mxu0 %v4527_v3  ;;  %4154 = vmatprep.subr.mxu1 %v4527_v3 }
  0xff   : > { %4120 = vmatpush3.msra.mxu0 %v1596_v26  ;;  %4155 = vmatpush3.msra.mxu1 %v1612_v27  ;;  %v3506_v27 = vld [vmem:[%s5571_s8 + $0x2] ss:$0 sm:$0xff] }
 0x100   : > { %4121 = vmatprep.subr.mxu0 %v4527_v3  ;;  %4156 = vmatprep.subr.mxu1 %v4527_v3 }
 0x101   : > { %4122 = vmatpush3.msra.mxu0 %v1595_v28  ;;  %4157 = vmatpush3.msra.mxu1 %v1611_v29  ;;  %v3507_v28 = vld [vmem:[%s5571_s8 + $0x3] ss:$0 sm:$0xff] }
 0x102   : > { %4123 = vmatprep.subr.mxu0 %v4527_v3  ;;  %4158 = vmatprep.subr.mxu1 %v4527_v3 }
 0x103   : > { %4124 = vmatpush3.msra.mxu0 %v1594_v30  ;;  %4159 = vmatpush3.msra.mxu1 %v1610_v31  ;;  %v3502_v31 = vld [vmem:[%s5572_s18 + $0x2] ss:$0 sm:$0xff] }
 0x104   : > { %4125 = vmatprep.subr.mxu0 %v4527_v3  ;;  %4160 = vmatprep.subr.mxu1 %v4527_v3 }
 0x105   : > { %4126 = vmatpush3.msra.mxu0 %v1593_v32  ;;  %4161 = vmatpush3.msra.mxu1 %v1609_v33  ;;  %v3503_v32 = vld [vmem:[%s5572_s18 + $0x3] ss:$0 sm:$0xff] }
 0x106   : > { %4127 = vmatprep.subr.mxu0 %v4527_v3  ;;  %4162 = vmatprep.subr.mxu1 %v4527_v3 }
 0x107   : > { %4128 = vmatpush3.msra.mxu0 %v1592_v35  ;;  %4163 = vmatpush3.msra.mxu1 %v1608_v36 }
 0x108   : > { %4129 = vmatprep.subr.mxu0 %v4527_v3  ;;  %4164 = vmatprep.subr.mxu1 %v4527_v3 }
 0x109   : > { %4130 = vmatpush3.msra.mxu0 %v1591_v37  ;;  %4165 = vmatpush3.msra.mxu1 %v1607_v38 }
 0x10a   : > { %4131 = vmatprep.mubr.msk.f32.mxu0 %vm4528_vm0, %v4527_v3  ;;  %4166 = vmatprep.mubr.msk.f32.mxu1 %vm4528_vm0, %v4527_v3 }
 0x10b   : > { %4169 = vmatprep.subr.mxu0 %v4527_v3  ;;  %4204 = vmatprep.subr.mxu1 %v4527_v3 }
 0x10c   : > { %4132 = vmatmul.mubr.f32.vlgmr.msra.gmra.mxu0 %v4855_v34  ;;  %4167 = vmatmul.mubr.f32.vlgmr.msra.gmra.mxu1 %v4855_v34 }
 0x10d   : > { %4170 = vmatpush3.msra.mxu0 %v1638_v39  ;;  %4205 = vmatpush3.msra.mxu1 %v1654_v40  ;;  %v3508_v40 = vld [vmem:[%s5573_s26] ss:$0 sm:$0xff] }
 0x10e   : > { %4171 = vmatprep.subr.mxu0 %v4527_v3  ;;  %4206 = vmatprep.subr.mxu1 %v4527_v3 }
 0x10f   : > { %4172 = vmatpush3.msra.mxu0 %v1637_v41  ;;  %4207 = vmatpush3.msra.mxu1 %v1653_v42  ;;  %v3509_v41 = vld [vmem:[%s5573_s26 + $0x1] ss:$0 sm:$0xff] }
 0x110   : > { %4173 = vmatprep.subr.mxu0 %v4527_v3  ;;  %4208 = vmatprep.subr.mxu1 %v4527_v3 }
 0x111   : > { %4174 = vmatpush3.msra.mxu0 %v1636_v43  ;;  %4209 = vmatpush3.msra.mxu1 %v1652_v44 }
 0x112   : > { %4175 = vmatprep.subr.mxu0 %v4527_v3  ;;  %4210 = vmatprep.subr.mxu1 %v4527_v3 }
 0x113   : > { %4176 = vmatpush3.msra.mxu0 %v1635_v45  ;;  %4211 = vmatpush3.msra.mxu1 %v1651_v46 }
 0x114   : > { %4177 = vmatprep.subr.mxu0 %v4527_v3  ;;  %4212 = vmatprep.subr.mxu1 %v4527_v3 }
 0x115   : > { %4178 = vmatpush3.msra.mxu0 %v1634_v47  ;;  %4213 = vmatpush3.msra.mxu1 %v1650_v48 }
 0x116   : > { %4179 = vmatprep.subr.mxu0 %v4527_v3  ;;  %4214 = vmatprep.subr.mxu1 %v4527_v3 }
 0x117   : > { %4180 = vmatpush3.msra.mxu0 %v1633_v49  ;;  %4215 = vmatpush3.msra.mxu1 %v1649_v50 }
 0x118   : > { %4181 = vmatprep.subr.mxu0 %v4527_v3  ;;  %4216 = vmatprep.subr.mxu1 %v4527_v3 }
 0x119   : > { %4182 = vmatpush3.msra.mxu0 %v1632_v51  ;;  %4217 = vmatpush3.msra.mxu1 %v1648_v52  ;;  %v843_v52 = vlaneseq }
 0x11a   : > { %4183 = vmatprep.subr.mxu0 %v4527_v3  ;;  %4218 = vmatprep.subr.mxu1 %v4527_v3 }
 0x11b   : > { %4184 = vmatpush3.msra.mxu0 %v1631_v53  ;;  %4219 = vmatpush3.msra.mxu1 %v1647_v54  ;;  %v844_v53 = vand.u32 127, %v843_v52  ;;  %v845_v54 = vstv %s842_s0  ;;  %s3535_s0 = sshll.u32 %s5574_s24, 7 }
 0x11c   : > { %4185 = vmatprep.subr.mxu0 %v4527_v3  ;;  %4220 = vmatprep.subr.mxu1 %v4527_v3 }
 0x11d   : > { %4186 = vmatpush3.msra.mxu0 %v1630_v55  ;;  %4221 = vmatpush3.msra.mxu1 %v1646_v56  ;;  %vm5259_vm2 = vcmp.lt.s32.totalorder %v844_v53, %v845_v54  ;;  %v2622_v53 = vld [vmem:[%s4745_s21 + $0x38] sm:$0xff]  ;;  %v2615_v54 = vld [vmem:[%s4745_s21] sm:$0xff] }
 0x11e   : > { %4187 = vmatprep.subr.mxu0 %v4527_v3  ;;  %4222 = vmatprep.subr.mxu1 %v4527_v3 }
 0x11f   : > { %4188 = vmatpush3.msra.mxu0 %v1629_v57  ;;  %4223 = vmatpush3.msra.mxu1 %v1645_v58  ;;  %v2619_v57 = vld [vmem:[%s4745_s21 + $0x20] sm:$0xff] }
 0x120   : > { %4189 = vmatprep.subr.mxu0 %v4527_v3  ;;  %4224 = vmatprep.subr.mxu1 %v4527_v3 }
 0x121   : > { %4190 = vmatpush3.msra.mxu0 %v1628_v59  ;;  %4225 = vmatpush3.msra.mxu1 %v1644_v60 }
 0x122   : > { %4191 = vmatprep.subr.mxu0 %v4527_v3  ;;  %4226 = vmatprep.subr.mxu1 %v4527_v3 }
 0x123   : > { %4192 = vmatpush3.msra.mxu0 %v1627_v61  ;;  %4227 = vmatpush3.msra.mxu1 %v1643_v62 }
 0x124   : > { %4193 = vmatprep.subr.mxu0 %v4527_v3  ;;  %4228 = vmatprep.subr.mxu1 %v4527_v3 }
 0x125   : > { %4194 = vmatpush3.msra.mxu0 %v1626_v63  ;;  %4229 = vmatpush3.msra.mxu1 %v1642_v0 }
 0x126   : > { %4195 = vmatprep.subr.mxu0 %v4527_v3  ;;  %4230 = vmatprep.subr.mxu1 %v4527_v3 }
 0x127   : > { %4196 = vmatpush3.msra.mxu0 %v1625_v1  ;;  %4231 = vmatpush3.msra.mxu1 %v1641_v2 }
 0x128   : > { %4197 = vmatprep.subr.mxu0 %v4527_v3  ;;  %4232 = vmatprep.subr.mxu1 %v4527_v3 }
 0x129   : > { %4198 = vmatpush3.msra.mxu0 %v1624_v4  ;;  %4233 = vmatpush3.msra.mxu1 %v1640_v5 }
 0x12a   : > { %4199 = vmatprep.subr.mxu0 %v4527_v3  ;;  %4234 = vmatprep.subr.mxu1 %v4527_v3 }
 0x12b   : > { %4200 = vmatpush3.msra.mxu0 %v1623_v6  ;;  %4201 = vmatprep.mubr.msk.f32.mxu0 %vm4528_vm0, %v4527_v3 }
 0x12c   : > { %4235 = vmatpush3.msra.mxu1 %v1639_v7  ;;  %4236 = vmatprep.mubr.msk.f32.mxu1 %vm4528_vm0, %v4527_v3 }
 0x12d   : > { %4202 = vmatmul.mubr.f32.vlgmr.msra.gmra.mxu0 %v4855_v34  ;;  %4237 = vmatmul.mubr.f32.vlgmr.msra.gmra.mxu1 %v4855_v34 }
 0x12e   : > { %4239 = vmatprep.subr.mxu0 %v4527_v3  ;;  %4244 = vmatprep.subr.mxu1 %v4527_v3 }
 0x12f   : > { %4241 = vmatprep.mubr.msk.f32.mxu0 %vm4528_vm0, %v4527_v3  ;;  %4246 = vmatprep.mubr.msk.f32.mxu1 %vm4528_vm0, %v4527_v3 }
 0x142   : > { %v1005_v8 = vpop.f32.mrf.mxu0 }
 0x143   : > { %v1006_v25 = vadd.f32 %v3500_v19, %v1005_v8 }
 0x144   : > { %v3853_v9 = vpop.f32.mrf.mxu0  ;;  %v1075_v10 = vpop.f32.mrf.mxu1 }
 0x145   : > { %v1076_v26 = vadd.f32 %v3501_v20, %v1075_v10 }
 0x146   : > { %v3888_v11 = vpop.f32.mrf.mxu1 }
 0x164   : > { %v1145_v12 = vpop.f32.mrf.mxu0 }
 0x165   : > { %v1146_v38 = vadd.f32 %v3502_v31, %v1145_v12 }
 0x166   : > { %v3923_v13 = vpop.f32.mrf.mxu0  ;;  %v1215_v14 = vpop.f32.mrf.mxu1 }
 0x167   : > { %v1216_v39 = vadd.f32 %v3503_v32, %v1215_v14 }
 0x168   : > { %v3958_v34 = vpop.f32.mrf.mxu1 }
 0x187   : > { %v1377_v17 = vpop.f32.mrf.mxu0  ;;  %v1447_v18 = vpop.f32.mrf.mxu1 }
 0x188   : > { %v1378_v21 = vadd.f32 %v3504_v15, %v1377_v17  ;;  %v1448_v22 = vadd.f32 %v3505_v16, %v1447_v18 }
 0x189   : > { %v3993_v23 = vpop.f32.mrf.mxu0  ;;  %v4028_v24 = vpop.f32.mrf.mxu1 }
 0x18a   : > { %4240 = vmatpush3.xpose.msk.msra.mxu0 %vm1963_vm1, %v1378_v21  ;;  %4245 = vmatpush3.xpose.msk.msra.mxu1 %vm1963_vm1, %v1448_v22 }
 0x18b   : > { %4249 = vmatprep.subr.mxu0 %v4527_v3  ;;  %4254 = vmatprep.subr.mxu1 %v4527_v3 }
 0x18d   : > { %4242 = vmatmul.mubr.msk.f32.vlgmr.msra.gmra.mxu0 %vm1963_vm1, %v1006_v25  ;;  %4247 = vmatmul.mubr.msk.f32.vlgmr.msra.gmra.mxu1 %vm1963_vm1, %v1076_v26 }
 0x18e   : > { %4251 = vmatprep.mubr.msk.f32.mxu0 %vm4528_vm0, %v4527_v3  ;;  %4256 = vmatprep.mubr.msk.f32.mxu1 %vm4528_vm0, %v4527_v3 }
 0x1a9   : > { %v1517_v29 = vpop.f32.mrf.mxu0  ;;  %v1587_v30 = vpop.f32.mrf.mxu1 }
 0x1aa   : > { %v1518_v33 = vadd.f32 %v3506_v27, %v1517_v29  ;;  %v1588_v35 = vadd.f32 %v3507_v28, %v1587_v30 }
 0x1ab   : > { %v4063_v36 = vpop.f32.mrf.mxu0  ;;  %v4098_v37 = vpop.f32.mrf.mxu1 }
 0x1ac   : > { %4250 = vmatpush3.xpose.msk.msra.mxu0 %vm1963_vm1, %v1518_v33  ;;  %4255 = vmatpush3.xpose.msk.msra.mxu1 %vm1963_vm1, %v1588_v35  ;;  %v3510_v35 = vld [vmem:[%s5573_s26 + $0x2] ss:$0 sm:$0xff] }
 0x1ad   : > { %4259 = vmatprep.subr.mxu0 %v4527_v3  ;;  %4264 = vmatprep.subr.mxu1 %v4527_v3 }
 0x1af   : > { %4252 = vmatmul.mubr.msk.f32.vlgmr.msra.gmra.mxu0 %vm1963_vm1, %v1146_v38  ;;  %4257 = vmatmul.mubr.msk.f32.vlgmr.msra.gmra.mxu1 %vm1963_vm1, %v1216_v39  ;;  %v3511_v39 = vld [vmem:[%s5573_s26 + $0x3] ss:$0 sm:$0xff] }
 0x1b0   : > { %4261 = vmatprep.mubr.msk.f32.mxu0 %vm4528_vm0, %v4527_v3  ;;  %4266 = vmatprep.mubr.msk.f32.mxu1 %vm4528_vm0, %v4527_v3 }
 0x1cc   : > { %v1749_v42 = vpop.f32.mrf.mxu0  ;;  %v1819_v43 = vpop.f32.mrf.mxu1 }
 0x1cd   : > { %v1750_v44 = vadd.f32 %v3508_v40, %v1749_v42  ;;  %v1820_v45 = vadd.f32 %v3509_v41, %v1819_v43 }
 0x1ce   : > { %v4133_v46 = vpop.f32.mrf.mxu0  ;;  %v4168_v47 = vpop.f32.mrf.mxu1 }
 0x1cf   : > { %4260 = vmatpush3.msra.mxu0 %v1750_v44  ;;  %4265 = vmatpush3.msra.mxu1 %v1820_v45  ;;  %v2618_v47 = vld [vmem:[%s4745_s21 + $0x18] sm:$0xff] }
 0x1d0   : > { %4269 = vmatprep.subr.mxu0 %v4527_v3  ;;  %4274 = vmatprep.subr.mxu1 %v4527_v3 }
 0x1ed   : > { %v5253_v48 = vpop.f32.mrf.mxu0  ;;  %v5255_v49 = vpop.f32.mrf.mxu1 }
 0x1ee   : > { %v1890_v38 = vadd.f32 %v3510_v35, %v5253_v48  ;;  %v1960_v42 = vadd.f32 %v3511_v39, %v5255_v49  ;;  %v2617_v48 = vld [vmem:[%s4745_s21 + $0x10] sm:$0xff]  ;;  %v2984_v39 = vld [vmem:[%s4764_s4 + $0xa8] sm:$0xff] }
 0x1ef   : > { %v4203_v50 = vpop.f32.mrf.mxu0  ;;  %v4238_v51 = vpop.f32.mrf.mxu1 }
 0x1f0   : > { %v2616_v51 = vld [vmem:[%s4745_s21 + $0x8] sm:$0xff] }
 0x24d   : > { %v2036_v55 = vpop.f32.mrf.mxu0  ;;  %v2112_v56 = vpop.f32.mrf.mxu1 }
 0x24e   : > { %v2268_v58 = vmul.f32 0.17677669, %v2036_v55  ;;  %v2269_v59 = vmul.f32 0.17677669, %v2112_v56  ;;  %v2621_v55 = vld [vmem:[%s4745_s21 + $0x30] sm:$0xff]  ;;  %v2620_v56 = vld [vmem:[%s4745_s21 + $0x28] sm:$0xff] }
 0x24f   : > { %v4243_v60 = vpop.f32.mrf.mxu0  ;;  %v4248_v61 = vpop.f32.mrf.mxu1 }
 0x250   : > { %v2274_v62 = vsel %vm5259_vm2, %v2268_v58, -1e+09  ;;  %v2275_v0 = vsel %vm5259_vm2, %v2269_v59, -1e+09  ;;  %v2626_v58 = vld [vmem:[%s4745_s21 + $0x58] sm:$0xff]  ;;  %v2625_v60 = vld [vmem:[%s4745_s21 + $0x50] sm:$0xff] }
 0x251   : > { %v2279_v63 = vsel %vm2278_vm3, %v2274_v62, -inf  ;;  %v2282_v1 = vsel %vm2278_vm3, %v2275_v0, -inf }
 0x252   : > { %2280 = vmax.xlane.f32.xlu0 %v2279_v63  ;;  %v2630_v63 = vld [vmem:[%s4745_s21 + $0x78] sm:$0xff] }
 0x256   : > { %2283 = vmax.xlane.f32.xlu0 %v2282_v1  ;;  %v2623_v1 = vld [vmem:[%s4745_s21 + $0x40] sm:$0xff] }
 0x26f   : > { %v2188_v2 = vpop.f32.mrf.mxu0  ;;  %v2264_v4 = vpop.f32.mrf.mxu1 }
 0x270   : > { %v2270_v5 = vmul.f32 0.17677669, %v2188_v2  ;;  %v2271_v6 = vmul.f32 0.17677669, %v2264_v4  ;;  %v2629_v2 = vld [vmem:[%s4745_s21 + $0x70] sm:$0xff] }
 0x271   : > { %v4253_v7 = vpop.f32.mrf.mxu0  ;;  %v4258_v8 = vpop.f32.mrf.mxu1 }
 0x272   : > { %v2276_v9 = vsel %vm5259_vm2, %v2270_v5, -1e+09  ;;  %v2277_v11 = vsel %vm5259_vm2, %v2271_v6, -1e+09  ;;  %v2628_v5 = vld [vmem:[%s4745_s21 + $0x68] sm:$0xff]  ;;  %v2627_v6 = vld [vmem:[%s4745_s21 + $0x60] sm:$0xff] }
 0x273   : > { %v2285_v10 = vsel %vm2278_vm3, %v2276_v9, -inf  ;;  %v2288_v12 = vsel %vm2278_vm3, %v2277_v11, -inf }
 0x274   : > { %2286 = vmax.xlane.f32.xlu1 %v2285_v10 }
 0x278   : > { %2289 = vmax.xlane.f32.xlu1 %v2288_v12 }
 0x2db   : > { %v2281_v13 = vpop.xlane.xlu0 %2280 }
 0x2dc   : > { %v2291_v14 = vsub.f32 %v2274_v62, %v2281_v13  ;;  %v2624_v62 = vld [vmem:[%s4745_s21 + $0x48] sm:$0xff]  ;;  %s3232_s21 = sshll.u32 %s4788_s17, 4  ;;  %s3233_s21 = int_to_ptr.vmem [resolvable:$true] %s3232_s21 }
 0x2dd   : > { %s4430_s19 = scalar_lea.vmem %s3233_s21, 128 }
 0x2de   : > { %v2295_v34 = vmul.f32 1.442695, %v2291_v14  ;;  %p4431_p6 = scmp.ne.s32.totalorder %s3233_s21, %s4430_s19 }
 0x2df   : > { %v2284_v15 = vpop.xlane.xlu0 %2283 }
 0x2e0   : > { %4397 = vpow2.f32 %v2295_v34  ;;  %v2292_v16 = vsub.f32 %v2275_v0, %v2284_v15  ;;  %p4432_p7 = pnand %p4431_p6, %p4677_p8 }
 0x2e2   : > { %v2297_v17 = vmul.f32 1.442695, %v2292_v16  ;;  %p4433_p9 = pneg %p4432_p7 }
 0x2e4   : > { %4399 = vpow2.f32 %v2297_v17 }
 0x2ed   : > { %v4398_v18 = vpop.eup %4397 }
 0x2ee   : > { %v2303_v19 = vsel %vm2278_vm3, %v4398_v18, 0.0 }
 0x2ef   : > { %2304 = vadd.xlane.f32.xlu0 %v2303_v19 }
 0x2f1   : > { %v4400_v20 = vpop.eup %4399 }
 0x2f2   : > { %v2306_v21 = vsel %vm2278_vm3, %v4400_v20, 0.0 }
 0x2f3   : > { %2307 = vadd.xlane.f32.xlu1 %v2306_v21 }
 0x2fd   : > { %v2287_v22 = vpop.xlane.xlu1 %2286 }
 0x2fe   : > { %v2293_v23 = vsub.f32 %v2276_v9, %v2287_v22  ;;  %v4417_v22 = vld [vmem:[%s4788_s17] sm:$0xff] }
 0x300   : > { %v2299_v24 = vmul.f32 1.442695, %v2293_v23 }
 0x301   : > { %v2290_v25 = vpop.xlane.xlu1 %2289 }
 0x302   : > { %4401 = vpow2.f32 %v2299_v24  ;;  %v2294_v26 = vsub.f32 %v2277_v11, %v2290_v25  ;;  %v2994_v24 = vld [vmem:[%s4764_s4 + $0xf8] sm:$0xff]  ;;  %v2993_v25 = vld [vmem:[%s4764_s4 + $0xf0] sm:$0xff] }
 0x304   : > { %v2301_v27 = vmul.f32 1.442695, %v2294_v26  ;;  %v2992_v26 = vld [vmem:[%s4764_s4 + $0xe8] sm:$0xff] }
 0x306   : > { %4403 = vpow2.f32 %v2301_v27  ;;  %v2991_v27 = vld [vmem:[%s4764_s4 + $0xe0] sm:$0xff] }
 0x30f   : > { %v4402_v28 = vpop.eup %4401 }
 0x310   : > { %v2309_v29 = vsel %vm2278_vm3, %v4402_v28, 0.0 }
 0x311   : > { %2310 = vadd.xlane.f32.xlu0 %v2309_v29  ;;  %v2989_v29 = vld [vmem:[%s4764_s4 + $0xd0] sm:$0xff] }
 0x313   : > { %v4404_v30 = vpop.eup %4403 }
 0x314   : > { %v2312_v31 = vsel %vm2278_vm3, %v4404_v30, 0.0 }
 0x315   : > { %2313 = vadd.xlane.f32.xlu1 %v2312_v31  ;;  %v2987_v31 = vld [vmem:[%s4764_s4 + $0xc0] sm:$0xff] }
 0x378   : > { %v2305_v32 = vpop.xlane.xlu0 %2304 }
 0x379   : > { %4405 = vrcp.f32 %v2305_v32 }
 0x37c   : > { %v2308_v33 = vpop.xlane.xlu1 %2307 }
 0x37d   : > { %4407 = vrcp.f32 %v2308_v33 }
 0x386   : > { %v4406_v36 = vpop.eup %4405 }
 0x387   : > { %v2319_v37 = vmul.f32 %v4406_v36, %v4398_v18 }
 0x389   : > { %4262 = vmatmul.mubr.msk.f32.vlgmr.msra.gmra.mxu0 %vm2278_vm3, %v2319_v37  ;;  %v2986_v37 = vld [vmem:[%s4764_s4 + $0xb8] sm:$0xff] }
 0x38a   : > { %v4408_v40 = vpop.eup %4407  ;;  %4270 = vmatpush3.msra.mxu0 %v1890_v38  ;;  %4271 = vmatprep.mubr.msk.f32.mxu0 %vm4528_vm0, %v4527_v3  ;;  %v2985_v38 = vld [vmem:[%s4764_s4 + $0xb0] sm:$0xff] }
 0x38b   : > { %v2320_v41 = vmul.f32 %v4408_v40, %v4400_v20  ;;  %4279 = vmatprep.subr.mxu0 %v4527_v3  ;;  %v2983_v40 = vld [vmem:[%s4764_s4 + $0xa0] sm:$0xff] }
 0x38d   : > { %4267 = vmatmul.mubr.msk.f32.vlgmr.msra.gmra.mxu1 %vm2278_vm3, %v2320_v41  ;;  %v2982_v41 = vld [vmem:[%s4764_s4 + $0x98] sm:$0xff] }
 0x38e   : > { %4275 = vmatpush3.msra.mxu1 %v1960_v42  ;;  %4276 = vmatprep.mubr.msk.f32.mxu1 %vm4528_vm0, %v4527_v3  ;;  %v2981_v42 = vld [vmem:[%s4764_s4 + $0x90] sm:$0xff] }
 0x38f   : > { %4290 = vmatprep.subr.mxu1 %v4527_v3 }
 0x39a   : > { %v2311_v43 = vpop.xlane.xlu0 %2310 }
 0x39b   : > { %4409 = vrcp.f32 %v2311_v43  ;;  %v2980_v43 = vld [vmem:[%s4764_s4 + $0x88] sm:$0xff] }
 0x39e   : > { %v2314_v44 = vpop.xlane.xlu1 %2313 }
 0x39f   : > { %4411 = vrcp.f32 %v2314_v44  ;;  %v2979_v44 = vld [vmem:[%s4764_s4 + $0x80] sm:$0xff] }
 0x3a8   : > { %v4410_v45 = vpop.eup %4409 }
 0x3a9   : > { %v2321_v46 = vmul.f32 %v4410_v45, %v4402_v28  ;;  %v2990_v28 = vld [vmem:[%s4764_s4 + $0xd8] sm:$0xff] }
 0x3aa   : > { %v2978_v45 = vld [vmem:[%s4764_s4 + $0x78] sm:$0xff] }
 0x3ab   : > { %4272 = vmatmul.mubr.msk.f32.vlgmr.msra.gmra.mxu0 %vm2278_vm3, %v2321_v46  ;;  %v2977_v46 = vld [vmem:[%s4764_s4 + $0x70] sm:$0xff] }
 0x3ac   : > { %v4412_v49 = vpop.eup %4411  ;;  %4280 = vmatpush3.msra.mxu0 %v2618_v47  ;;  %4287 = vmatprep.mubr.msk.f32.mxu0 %vm4528_vm0, %v4527_v3  ;;  %v2976_v47 = vld [vmem:[%s4764_s4 + $0x68] sm:$0xff] }
 0x3ad   : > { %v2322_v50 = vmul.f32 %v4412_v49, %v4404_v30  ;;  %4281 = vmatprep.subr.mxu0 %v4527_v3  ;;  %v2988_v30 = vld [vmem:[%s4764_s4 + $0xc8] sm:$0xff]  ;;  %v2974_v49 = vld [vmem:[%s4764_s4 + $0x58] sm:$0xff] }
 0x3ae   : > { %4282 = vmatpush3.msra.mxu0 %v2617_v48  ;;  %v2975_v48 = vld [vmem:[%s4764_s4 + $0x60] sm:$0xff] }
 0x3af   : > { %4277 = vmatmul.mubr.msk.f32.vlgmr.msra.gmra.mxu1 %vm2278_vm3, %v2322_v50  ;;  %4283 = vmatprep.subr.mxu0 %v4527_v3  ;;  %v2973_v50 = vld [vmem:[%s4764_s4 + $0x50] sm:$0xff] }
 0x3b0   : > { %4284 = vmatpush3.msra.mxu0 %v2616_v51  ;;  %4291 = vmatpush3.msra.mxu1 %v2622_v53  ;;  %v2972_v51 = vld [vmem:[%s4764_s4 + $0x48] sm:$0xff]  ;;  %v2971_v53 = vld [vmem:[%s4764_s4 + $0x40] sm:$0xff] }
 0x3b1   : > { %4285 = vmatprep.subr.mxu0 %v4527_v3  ;;  %4292 = vmatprep.subr.mxu1 %v4527_v3 }
 0x3b2   : > { %4298 = vmatprep.mubr.msk.f32.mxu1 %vm4528_vm0, %v4527_v3  ;;  %4286 = vmatpush3.msra.mxu0 %v2615_v54  ;;  %v2970_v54 = vld [vmem:[%s4764_s4 + $0x38] sm:$0xff] }
 0x3b3   : > { %4293 = vmatpush3.msra.mxu1 %v2621_v55  ;;  %4301 = vmatprep.subr.mxu0 %v4527_v3  ;;  %v2969_v55 = vld [vmem:[%s4764_s4 + $0x30] sm:$0xff] }
 0x3b4   : > { %4294 = vmatprep.subr.mxu1 %v4527_v3 }
 0x3b5   : > { %4295 = vmatpush3.msra.mxu1 %v2620_v56  ;;  %v2968_v56 = vld [vmem:[%s4764_s4 + $0x28] sm:$0xff] }
 0x3b6   : > { %4296 = vmatprep.subr.mxu1 %v4527_v3 }
 0x3b7   : > { %4297 = vmatpush3.msra.mxu1 %v2619_v57  ;;  %v2967_v57 = vld [vmem:[%s4764_s4 + $0x20] sm:$0xff] }
 0x3b8   : > { %4312 = vmatprep.subr.mxu1 %v4527_v3 }
 0x449   : > { %v2392_v59 = vpop.f32.mrf.mxu0 }
 0x44a   : > { %4288 = vmatmul.mubr.msk.f32.vlgmr.msra.gmra.mxu0 %vm1963_vm1, %v2392_v59  ;;  %v2965_v59 = vld [vmem:[%s4764_s4 + $0x10] sm:$0xff] }
 0x44b   : > { %v4263_v61 = vpop.f32.mrf.mxu0  ;;  %4302 = vmatpush3.msra.mxu0 %v2626_v58  ;;  %4309 = vmatprep.mubr.msk.f32.mxu0 %vm4528_vm0, %v4527_v3  ;;  %v2966_v58 = vld [vmem:[%s4764_s4 + $0x18] sm:$0xff] }
 0x44c   : > { %4303 = vmatprep.subr.mxu0 %v4527_v3  ;;  %v2963_v61 = vld [vmem:[%s4764_s4] sm:$0xff] }
 0x44d   : > { %v2465_v0 = vpop.f32.mrf.mxu1  ;;  %4304 = vmatpush3.msra.mxu0 %v2625_v60  ;;  %v2964_v60 = vld [vmem:[%s4764_s4 + $0x8] sm:$0xff]  ;;  %s3230_s4 = scalar_lea.hbm %s5584_s28, %s3535_s0 }
 0x44e   : > { %4299 = vmatmul.mubr.msk.f32.vlgmr.msra.gmra.mxu1 %vm1963_vm1, %v2465_v0  ;;  %4305 = vmatprep.subr.mxu0 %v4527_v3  ;;  %v3110_v0 = vld [vmem:[%s4774_s27 + $0xf0] sm:$0xff] }
 0x44f   : > { %v4268_v4 = vpop.f32.mrf.mxu1  ;;  %4306 = vmatpush3.msra.mxu0 %v2624_v62  ;;  %4313 = vmatpush3.msra.mxu1 %v2630_v63  ;;  %v3111_v62 = vld [vmem:[%s4774_s27 + $0xf8] sm:$0xff] }
 0x450   : > { %4307 = vmatprep.subr.mxu0 %v4527_v3  ;;  %4314 = vmatprep.subr.mxu1 %v4527_v3  ;;  %v3095_v63 = vld [vmem:[%s4774_s27 + $0x78] sm:$0xff]  ;;  %v3093_v4 = vld [vmem:[%s4774_s27 + $0x68] sm:$0xff] }
 0x451   : > { %4308 = vmatpush3.msra.mxu0 %v2623_v1  ;;  %4315 = vmatpush3.msra.mxu1 %v2629_v2  ;;  %v3094_v1 = vld [vmem:[%s4774_s27 + $0x70] sm:$0xff]  ;;  %v3109_v2 = vld [vmem:[%s4774_s27 + $0xe8] sm:$0xff] }
 0x452   : > { %4316 = vmatprep.subr.mxu1 %v4527_v3  ;;  %4320 = vmatprep.mubr.msk.f32.mxu1 %vm4528_vm0, %v4527_v3 }
 0x453   : > { %4317 = vmatpush3.msra.mxu1 %v2628_v5  ;;  %3007 = vmatprep.subr.mxu0 %v2994_v24  ;;  %v3108_v5 = vld [vmem:[%s4774_s27 + $0xe0] sm:$0xff] }
 0x454   : > { %4318 = vmatprep.subr.mxu1 %v4527_v3 }
 0x455   : > { %4319 = vmatpush3.msra.mxu1 %v2627_v6  ;;  %v3092_v6 = vld [vmem:[%s4774_s27 + $0x60] sm:$0xff] }
 0x456   : > { %3784 = vmatprep.subr.mxu1 %v3111_v62 }
 0x46b   : > { %v2538_v7 = vpop.f32.mrf.mxu0 }
 0x46c   : > { %4310 = vmatmul.mubr.msk.f32.vlgmr.msra.gmra.mxu0 %vm1963_vm1, %v2538_v7  ;;  %v3107_v7 = vld [vmem:[%s4774_s27 + $0xd8] sm:$0xff] }
 0x46d   : > { %v4273_v8 = vpop.f32.mrf.mxu0  ;;  %3071 = vmatprep.mubr.f32.mxu0 %v4527_v3  ;;  %v3528_v3 = vld [vmem:[%s5577_s1] ss:$0 sm:$0xff]  ;;  %3008 = vmatpush1.msra.mxu0 %v2993_v25 }
 0x46e   : > { %3009 = vmatprep.subr.mxu0 %v2992_v26  ;;  %v3091_v8 = vld [vmem:[%s4774_s27 + $0x58] sm:$0xff]  ;;  %v3529_v25 = vld [vmem:[%s5578_s2] ss:$0 sm:$0xff] }
 0x46f   : > { %v2611_v9 = vpop.f32.mrf.mxu1  ;;  %3010 = vmatpush1.msra.mxu0 %v2991_v27  ;;  %v3530_v27 = vld [vmem:[%s5580_s3] ss:$0 sm:$0xff] }
 0x470   : > { %4321 = vmatmul.mubr.msk.f32.vlgmr.msra.gmra.mxu1 %vm1963_vm1, %v2611_v9  ;;  %3011 = vmatprep.subr.mxu0 %v2990_v28  ;;  %v3106_v9 = vld [vmem:[%s4774_s27 + $0xd0] sm:$0xff] }
 0x471   : > { %v4278_v10 = vpop.f32.mrf.mxu1  ;;  %3012 = vmatpush1.msra.mxu0 %v2989_v29  ;;  %3785 = vmatpush3.msra.mxu1 %v3095_v63 }
 0x472   : > { %3013 = vmatprep.subr.mxu0 %v2988_v30  ;;  %3786 = vmatprep.subr.mxu1 %v3110_v0  ;;  %v3090_v10 = vld [vmem:[%s4774_s27 + $0x50] sm:$0xff]  ;;  %v3099_v30 = vld [vmem:[%s4774_s27 + $0x98] sm:$0xff] }
 0x473   : > { %3014 = vmatpush1.msra.mxu0 %v2987_v31  ;;  %3787 = vmatpush3.msra.mxu1 %v3094_v1  ;;  %v3083_v31 = vld [vmem:[%s4774_s27 + $0x18] sm:$0xff]  ;;  %v3532_v1 = vld [vmem:[%s831_s6] ss:$0 sm:$0xff]  ;;  %s4529_s6 = smov [#allocation4]  }
 0x474   : > { %3015 = vmatprep.subr.mxu0 %v2986_v37  ;;  %3788 = vmatprep.subr.mxu1 %v3109_v2  ;;  %v3096_v37 = vld [vmem:[%s4774_s27 + $0x80] sm:$0xff]  ;;  %s4434_s29 = sshll.u32 %s4529_s6, 4  ;;  %s4435_s29 = int_to_ptr.vmem [resolvable:$false] %s4434_s29 }
 0x475   : > { %3016 = vmatpush1.msra.mxu0 %v2985_v38  ;;  %3789 = vmatpush3.msra.mxu1 %v3093_v4  ;;  %v3080_v38 = vld [vmem:[%s4774_s27] sm:$0xff]  ;;  %p4437_p10 = scmp.lt.s32.totalorder %s3233_s21, %s4435_s29 }
 0x476   : > { %3017 = vmatprep.subr.mxu0 %v2984_v39  ;;  %3790 = vmatprep.subr.mxu1 %v3108_v5  ;;  %v2998_v39 = vshrl.u32 %v843_v52, 7  ;;  %v3533_v4 = vld [vmem:[%s834_s11] ss:$0 sm:$0xff]  ;;  %s4436_s11 = scalar_lea.vmem %s4435_s29, 256 }
 0x477   : > { %3018 = vmatpush1.msra.mxu0 %v2983_v40  ;;  %3791 = vmatpush3.msra.mxu1 %v3092_v6  ;;  %p4438_p11 = scmp.lt.s32.totalorder %s4436_s11, %s4430_s19 }
 0x478   : > { %3019 = vmatprep.subr.mxu0 %v2982_v41  ;;  %3792 = vmatprep.subr.mxu1 %v3107_v7  ;;  %v2999_v40 = vsub.s32 0, %v2998_v39  ;;  %v2995_v41 = vld [vmem:[%s4769_s23] sm:$0x3]  ;;  %s5581_s23 = sld [smem:[#allocation9_spill]] }
 0x479   : > { %3020 = vmatpush1.msra.mxu0 %v2981_v42  ;;  %3793 = vmatpush3.msra.mxu1 %v3091_v8  ;;  %v3003_v42 = vsub.s32 1, %v2998_v39  ;;  %p4439_p12 = por %p4438_p11, %p4437_p10 }
 0x47a   : > { %3021 = vmatprep.subr.mxu0 %v2980_v43  ;;  %3794 = vmatprep.subr.mxu1 %v3106_v9  ;;  %v3000_v43 = vrot.slane %v2995_v41, %v2999_v40 }
 0x47b   : > { %3022 = vmatpush1.msra.mxu0 %v2979_v44  ;;  %3795 = vmatpush3.msra.mxu1 %v3090_v10  ;;  %v3004_v44 = vrot.slane %v2995_v41, %v3003_v42  ;;  %p4440_p13 = pnand %p4439_p12, %p4433_p9 }
 0x47c   : > { %3023 = vmatprep.subr.mxu0 %v2978_v45 }
 0x47d   : > { %3024 = vmatpush1.msra.mxu0 %v2977_v46 }
 0x47e   : > { %3025 = vmatprep.subr.mxu0 %v2976_v47  ;;  %s5585_s2 = sand.u32 1, %s5581_s23  }
 0x47f   : > { %3026 = vmatpush1.msra.mxu0 %v2975_v48  ;;  %s3219_s30 = scalar_lea.sflag [#allocation5], %s5585_s2 }
 0x480   : > { %3027 = vmatprep.subr.mxu0 %v2974_v49 }
 0x481   : > { %3028 = vmatpush1.msra.mxu0 %v2973_v50 }
 0x482   : > { %3029 = vmatprep.subr.mxu0 %v2972_v51 }
 0x483   : > { %3030 = vmatpush1.msra.mxu0 %v2971_v53  ;;  %v3531_v53 = vld [vmem:[%s828_s25] ss:$0 sm:$0xff] }
 0x484   : > { %3031 = vmatprep.subr.mxu0 %v2970_v54 }
 0x485   : > { %3032 = vmatpush1.msra.mxu0 %v2969_v55 }
 0x486   : > { %3033 = vmatprep.subr.mxu0 %v2968_v56 }
 0x487   : > { %3034 = vmatpush1.msra.mxu0 %v2967_v57 }
 0x488   : > { %3035 = vmatprep.subr.mxu0 %v2966_v58 }
 0x489   : > { %3036 = vmatpush1.msra.mxu0 %v2965_v59 }
 0x48a   : > { %3037 = vmatprep.subr.mxu0 %v2964_v60 }
 0x48b   : > { %3038 = vmatpush1.msra.mxu0 %v2963_v61 }
 0x50a   : > { %v2700_v11 = vpop.f32.mrf.mxu0 }
 0x50c   : > { %v4289_v12 = vpop.f32.mrf.mxu0 }
 0x50d   : > { %v3089_v12 = vld [vmem:[%s4774_s27 + $0x48] sm:$0xff] }
 0x50e   : > { %v2773_v13 = vpop.f32.mrf.mxu1 }
 0x50f   : > { %v2923_v15 = vadd.f32 %v2773_v13, %v2700_v11  ;;  %v3105_v11 = vld [vmem:[%s4774_s27 + $0xc8] sm:$0xff]  ;;  %v3104_v13 = vld [vmem:[%s4774_s27 + $0xc0] sm:$0xff] }
 0x510   : > { %v4300_v14 = vpop.f32.mrf.mxu1  ;;  %3796 = vmatprep.subr.mxu1 %v3105_v11 }
 0x511   : > { %v3088_v14 = vld [vmem:[%s4774_s27 + $0x40] sm:$0xff]  ;;  %3797 = vmatpush3.msra.mxu1 %v3089_v12 }
 0x512   : > { %3798 = vmatprep.subr.mxu1 %v3104_v13 }
 0x513   : > { %3799 = vmatpush3.msra.mxu1 %v3088_v14 }
 0x52c   : > { %v2846_v34 = vpop.f32.mrf.mxu0 }
 0x52d   : > { %v2924_v17 = vadd.f32 %v2923_v15, %v2846_v34  ;;  %v3103_v34 = vld [vmem:[%s4774_s27 + $0xb8] sm:$0xff] }
 0x52e   : > { %v4311_v16 = vpop.f32.mrf.mxu0  ;;  %v3087_v15 = vld [vmem:[%s4774_s27 + $0x38] sm:$0xff]  ;;  %3800 = vmatprep.subr.mxu1 %v3103_v34 }
 0x52f   : > { %v3102_v16 = vld [vmem:[%s4774_s27 + $0xb0] sm:$0xff]  ;;  %3801 = vmatpush3.msra.mxu1 %v3087_v15 }
 0x530   : > { %v2919_v18 = vpop.f32.mrf.mxu1  ;;  %3802 = vmatprep.subr.mxu1 %v3102_v16 }
 0x531   : > { %v2925_v19 = vadd.f32 %v2924_v17, %v2919_v18  ;;  %v3086_v17 = vld [vmem:[%s4774_s27 + $0x30] sm:$0xff]  ;;  %v3101_v18 = vld [vmem:[%s4774_s27 + $0xa8] sm:$0xff] }
 0x532   : > { %v4322_v20 = vpop.f32.mrf.mxu1  ;;  %3803 = vmatpush3.msra.mxu1 %v3086_v17 }
 0x533   : > { %v2933_v21 = vadd.f32 %v3528_v3, %v2925_v19  ;;  %v3085_v3 = vld [vmem:[%s4774_s27 + $0x28] sm:$0xff]  ;;  %v3100_v19 = vld [vmem:[%s4774_s27 + $0xa0] sm:$0xff]  ;;  %3804 = vmatprep.subr.mxu1 %v3101_v18 }
 0x534   : > { %v3084_v20 = vld [vmem:[%s4774_s27 + $0x20] sm:$0xff]  ;;  %3805 = vmatpush3.msra.mxu1 %v3085_v3 }
 0x535   : > { %v2934_v23 = vadd.f32 %v4417_v22, %v2933_v21  ;;  %3806 = vmatprep.subr.mxu1 %v3100_v19 }
 0x536   : > { %3807 = vmatpush3.msra.mxu1 %v3084_v20 }
 0x537   : > { %2935 = vadd.xlane.f32.xlu0 %v2934_v23  ;;  %3808 = vmatprep.subr.mxu1 %v3099_v30 }
 0x538   : > { %3809 = vmatpush3.msra.mxu1 %v3083_v31 }
 0x5c0   : > { %v2936_v32 = vpop.xlane.xlu0 %2935 }
 0x5c1   : > { %v2938_v33 = vmul.f32 0.0078125, %v2936_v32  ;;  %v3098_v32 = vld [vmem:[%s4774_s27 + $0x90] sm:$0xff] }
 0x5c2   : > { %3810 = vmatprep.subr.mxu1 %v3098_v32 }
 0x5c3   : > { %v5350_v35 = vsub.f32 %v2934_v23, %v2938_v33  ;;  %v3082_v33 = vld [vmem:[%s4774_s27 + $0x10] sm:$0xff] }
 0x5c4   : > { %3811 = vmatpush3.msra.mxu1 %v3082_v33 }
 0x5c5   : > { %v2940_v36 = vmul.f32 %v5350_v35, %v5350_v35 }
 0x5c7   : > { %2941 = vadd.xlane.f32.xlu1 %v2940_v36  ;;  %v3081_v36 = vld [vmem:[%s4774_s27 + $0x8] sm:$0xff] }
 0x650   : > { %v2942_v21 = vpop.xlane.xlu1 %2941 }
 0x651   : > { %v2943_v22 = vmul.f32 0.0078125, %v2942_v21 }
 0x653   : > { %v2944_v23 = vadd.f32 1e-05, %v2943_v22 }
 0x655   : > { %4413 = vrsqrt.f32 %v2944_v23 }
 0x662   : > { %v4414_v24 = vpop.eup %4413 }
 0x663   : > { %v2946_v26 = vmul.f32 %v4414_v24, %v5350_v35  ;;  %v3097_v35 = vld [vmem:[%s4774_s27 + $0x88] sm:$0xff] }
 0x664   : > { %3812 = vmatprep.subr.mxu1 %v3097_v35 }
 0x665   : > { %v2954_v28 = vmul.f32 %v3529_v25, %v2946_v26  ;;  %3813 = vmatpush3.msra.mxu1 %v3081_v36 }
 0x666   : > { %3814 = vmatprep.subr.mxu1 %v3096_v37 }
 0x667   : > { %v2962_v29 = vadd.f32 %v3530_v27, %v2954_v28  ;;  %3815 = vmatpush3.msra.mxu1 %v3080_v38 }
 0x669   : > { %3072 = vmatmul.mubr.f32.vlgmr.msra.gmra.mxu0 %v2962_v29 }
 0x729   : > { %v3073_v45 = vpop.f32.mrf.mxu0 }
 0x72a   : > { %v3074_v46 = vadd.f32 %v3073_v45, %v3000_v43 }
 0x72b   : > { %v3075_v47 = vpop.f32.mrf.mxu0 }
 0x72c   : > { %v3076_v48 = vadd.f32 %v3075_v47, %v3004_v44  ;;  %v3078_v50 = vmax.f32 %v3074_v46, 0.0 }
 0x72e   : > { %v3079_v49 = vmax.f32 %v3076_v48, 0.0 }
 0x730   : > { %3183 = vmatprep.mubr.f32.mxu1 %v3079_v49 }
 0x731   : > { %3184 = vmatmul.mubr.f32.vlgmr.msra.gmra.mxu1 %v3078_v50 }
 0x7f1   : > { %v3816_v51 = vpop.f32.mrf.mxu1 }
 0x7f3   : > { %v3817_v52 = vpop.f32.mrf.mxu1 }
 0x7f4   : > { %v3818_v54 = vadd.f32 %v3817_v52, %v3816_v51 }
 0x7f6   : > { %v3186_v55 = vadd.f32 %v3818_v54, %v3531_v53 }
 0x7f8   : > { %v3189_v56 = vadd.f32 %v3186_v55, %v2962_v29 }
 0x7fa   : > { %3190 = vadd.xlane.f32.xlu0 %v3189_v56 }
 0x883   : > { %v3191_v57 = vpop.xlane.xlu0 %3190 }
 0x884   : > { %v3192_v58 = vmul.f32 0.0078125, %v3191_v57 }
 0x886   : > { %v3193_v59 = vsub.f32 %v3189_v56, %v3192_v58 }
 0x888   : > { %v3194_v60 = vmul.f32 %v3193_v59, %v3193_v59 }
 0x88a   : > { %3195 = vadd.xlane.f32.xlu1 %v3194_v60 }
 0x913   : > { %v3196_v61 = vpop.xlane.xlu1 %3195 }
 0x914   : > { %v3197_v62 = vmul.f32 0.0078125, %v3196_v61 }
 0x916   : > { %v3198_v63 = vadd.f32 1e-05, %v3197_v62 }
 0x918   : > { %4415 = vrsqrt.f32 %v3198_v63 }
 0x925   : > { %v4416_v0 = vpop.eup %4415 }
 0x926   : > { %v3200_v2 = vmul.f32 %v4416_v0, %v3193_v59 }
 0x928   : > { %v3208_v5 = vmul.f32 %v3532_v1, %v3200_v2 }
 0x92a   : > { %v3216_v6 = vadd.f32 %v3533_v4, %v3208_v5 }
 0x92c   : > { %3217 = vst [vmem:[%s4788_s17] sm:$0xff] %v3216_v6 }
 0x92d   : > { %4443 = shalt.err (!%p4440_p13)
}
 0x92e   : > { %s4444_s24 = scalar_lea.hbm %s3230_s4, 128  ;;  %s4448_s3 = scalar_lea.hbm %s5584_s28, 256 }
 0x92f   : > { %p4445_p1 = scmp.ne.s32.totalorder %s3230_s4, %s4444_s24  ;;  %p4449_p4 = scmp.lt.s32.totalorder %s3230_s4, %s5584_s28 }
 0x930   : > { %p4450_p5 = scmp.lt.s32.totalorder %s4448_s3, %s4444_s24 }
 0x931   : > { %p4446_p2 = pnand %p4445_p1, %p4677_p8 }
 0x932   : > { %p4451_p6 = por %p4450_p5, %p4449_p4 }
 0x933   : > { %p4447_p3 = pneg %p4446_p2 }
 0x935   : > { %p4452_p7 = pnand %p4451_p6, %p4447_p3 }
 0x937   : > { %4455 = shalt.err (!%p4452_p7)
}
 0x938   : > { %4323 = dma.vmem_to_hbm [thread:$0]  (%p4677_p8), %s3233_s21, 128, %s3230_s4, %s3219_s30  }
 0x939 PF: > { %s5586_s23 = sld [smem:[#allocation15_spill]] }
 0x93a   : > { %s5587_s22 = sld [smem:[#allocation8_spill]] }
 0x93f   : > { %p4329_p9 = scmp.ge.s32.totalorder %s5586_s23, 2 }
 0x940   : > { %s3244_s8 = sand.u32 1, %s5587_s22  }
 0x941   : > { %p4326_p10 = pnand %p4329_p9, %p4687_p0  ;;  %s3245_s18 = scalar_lea.sflag [#allocation5], %s3244_s8 }
 0x943   : > { %p4327_p11 = pneg %p4326_p10 }
 0x945   : > { %4491 = dma.done.wait (%p4327_p11), %s3245_s18, 128  }
 0x946   : > { %4493 = vsyncadd (%p4327_p11), %s3245_s18, 4294967168  ;;  %s37_s12 = sadd.s32 1, %s5586_s23   ;;  %s5589_s19 = sld [smem:[#allocation9_spill]] }
 0x947   : > { %p34_p12 = scmp.ge.s32.totalorder %s37_s12, 6   ;;  %s5590_s1 = sld [smem:[#allocation10_spill]] }
 0x948   : > { %s5591_s20 = sld [smem:[#allocation20_spill]] }
 0x949   : > { %s5592_s21 = sld [smem:[#allocation13_spill]]  ;;  %36 = sbr.rel (!%p34_p12) target bundleno = 39 (0x27), region = 175 }
 0x94a   : > { %s5593_s22 = sld [smem:[#allocation14_spill]] }
 0x94b   : > { %s5594_s2 = sld [smem:[#allocation16_spill]] }
 0x94c   : > { %s5595_s23 = sld [smem:[#allocation18_spill]] }
 0x94e   :  { %3250 = vsyncpa [#allocation5], 1 }
 0x94f   :  { %3252 = vsyncpa [#allocation5 + $0x1], 1 }

</bundles_post_ra>
